<compile_context>
chip_gen: v7x
topology: tpu7x:2x2x1
jax: 0.10.0
libtpu: 0.0.40
codegen_flags: <defaults>
</compile_context>

<pallas_src>
import jax
import jax.numpy as jnp
from jax.experimental import pallas as pl
from jax.experimental.pallas import tpu as pltpu

# ---------------- synthetic config (small) ----------------
B, SEQ = 2, 8
EMB = 32                 # config.embedding_size
HID = 32                 # config.hidden_size
HEADS = 4                # config.num_attention_heads
HEAD_DIM = HID // HEADS
INTER = 64               # config.intermediate_size
NUM_HIDDEN_LAYERS = 2    # config.num_hidden_layers (num_hidden_groups=1, inner_group_num=1)
LN_EPS = 1e-12

assert HEAD_DIM & (HEAD_DIM - 1) == 0, "in-kernel head selector assumes power-of-2 head dim"
_HEAD_SHIFT = (HEAD_DIM - 1).bit_length()

# bf16 MXU operands everywhere (v5e/v6e/v7x MXUs are bf16-native); accumulation
# stays f32 via preferred_element_type and all elementwise math stays f32.
MXU_DTYPE = jnp.bfloat16


# ---------------- shared math helpers (pure jnp; kernel + reference) ----------


def _elu_plus_one(x):
    # elu(x) + 1 == x + 1 (x > 0) else exp(x)   (elementwise, f32)
    return jnp.where(x > 0, x + 1.0, jnp.exp(x))


def _layernorm(x, g, b):
    # two-pass LN (subtract mean first): no E[x^2]-E[x]^2 cancellation risk.
    m = jnp.mean(x, axis=-1, keepdims=True)
    c = x - m
    var = jnp.mean(c * c, axis=-1, keepdims=True)
    return c * jax.lax.rsqrt(var + LN_EPS) * g + b


# ---------------- fused Pallas kernel (single invocation, no grid) -------------


def oskar_forward_kernel(x_ref, mask_ref,
                         embw_ref, embb_ref, wqkv_ref, bqkv_ref,
                         wd_ref, bd_ref, g1_ref, bt1_ref,
                         wf_ref, bf_ref, wo_ref, bo_ref,
                         g2_ref, bt2_ref, out_ref):
    f32 = jnp.float32
    x = x_ref[...]            # (B*SEQ, EMB)  MXU_DTYPE, batches row-stacked
    mask = mask_ref[...]      # (B*SEQ, 1)    f32 per-token multiplicative mask

    # In-kernel block-diagonal head selector (iota + shift + compare; cheap VPU ops,
    # computed once, outside the layer loop -> no input DMA, no per-step cast).
    row = jax.lax.broadcasted_iota(jnp.int32, (HID, HID), 0)
    col = jax.lax.broadcasted_iota(jnp.int32, (HID, HID), 1)
    head_sel = ((row >> _HEAD_SHIFT) == (col >> _HEAD_SHIFT)).astype(f32)   # (HID, HID)

    # Hoisted weight loads (re-used by every layer iteration; already MXU dtype).
    emb_w = embw_ref[...]
    emb_b = embb_ref[...]
    wqkv, bqkv = wqkv_ref[...], bqkv_ref[...]
    wd, bd = wd_ref[...], bd_ref[...]
    g1, bt1 = g1_ref[...], bt1_ref[...]
    wf, bf = wf_ref[...], bf_ref[...]
    wo, bo = wo_ref[...], bo_ref[...]
    g2, bt2 = g2_ref[...], bt2_ref[...]

    ones_col = jnp.ones((SEQ, 1), MXU_DTYPE)

    # embedding_hidden_mapping_in (all tokens of all batches in one matmul)
    h = jnp.dot(x, emb_w, preferred_element_type=f32) + emb_b            # (B*SEQ, HID) f32

    def layer_body(_, h):
        hq = h.astype(MXU_DTYPE)
        # Fused QKV projection: one 96-lane matmul on the full (B*SEQ) row stack.
        qkv = jnp.dot(hq, wqkv, preferred_element_type=f32) + bqkv       # (B*SEQ, 3*HID)
        q = _elu_plus_one(qkv[:, :HID])                                  # (B*SEQ, HID)
        k = _elu_plus_one(qkv[:, HID:2 * HID]) * mask                    # mask applied once
        v = qkv[:, 2 * HID:]

        kq, vq, qq = k.astype(MXU_DTYPE), v.astype(MXU_DTYPE), q.astype(MXU_DTYPE)

        # Batch-coupled piece: tiny unrolled loop (B=2).  Per batch:
        #   1) one MXU launch gives ctx AND the key-sum column:  k^T @ [v | 1]
        #   2) one MXU launch gives numerator AND denominator:
        #        q @ [ctx*head_sel | ksum_col*head_sel]   (SEQ,HID)x(HID,2*HID)
        attn_rows = []
        for b in range(B):
            lo, hi = b * SEQ, (b + 1) * SEQ
            kb, qb = kq[lo:hi], qq[lo:hi]
            vaug = jnp.concatenate([vq[lo:hi], ones_col], axis=1)        # (SEQ, HID+1)
            ctxa = jnp.einsum('nd,ne->de', kb, vaug,
                              preferred_element_type=f32)                # (HID, HID+1)
            ctx = ctxa[:, :HID] * head_sel                               # (HID, HID)
            kcol = ctxa[:, HID:HID + 1]                                  # (HID, 1) key sum
            rhs = jnp.concatenate([ctx, kcol * head_sel],
                                  axis=1).astype(MXU_DTYPE)              # (HID, 2*HID)
            nd = jnp.dot(qb, rhs, preferred_element_type=f32)            # (SEQ, 2*HID)
            attn_rows.append(nd[:, :HID] *
                             pl.reciprocal(nd[:, HID:], approx=True))    # divide -> EUP slot
        attn_ctx = jnp.concatenate(attn_rows, axis=0)                    # (B*SEQ, HID)

        # attention dense + residual + LN (full row stack)
        proj = jnp.dot(attn_ctx.astype(MXU_DTYPE), wd, preferred_element_type=f32) + bd
        attn_out = _layernorm(h + proj, g1, bt1)

        # FFN (gelu_new / tanh) + residual + LN (full row stack)
        f = jnp.dot(attn_out.astype(MXU_DTYPE), wf, preferred_element_type=f32) + bf
        f = jax.nn.gelu(f, approximate=True)
        f = jnp.dot(f.astype(MXU_DTYPE), wo, preferred_element_type=f32) + bo
        return _layernorm(f + attn_out, g2, bt2)

    h = jax.lax.fori_loop(0, NUM_HIDDEN_LAYERS, layer_body, h, unroll=True)
    # TODO(synk): output is a 32-lane f32 store (masked vst); packing to a lane-dense
    # (1, B*SEQ*HID) slab would cost an (8,128)-crossing relayout and doesn't pay at
    # these shapes — revisit only if SEQ/HID are scaled toward real ALBERT sizes.
    out_ref[...] = h.astype(out_ref.dtype)


# ---------------- wrapper ----------------


def oskar_transformer(x, mask, emb_w, emb_b, layer_params):
    (wq, bq, wk, bk, wv, bv, wd, bd, g1, bt1,
     wf, bf, wo, bo, g2, bt2) = layer_params
    Bsz, N, E = x.shape
    hid = emb_w.shape[1]
    inter = wf.shape[1]

    # Wrapper-side layout plumbing (constant-folded / fused by XLA):
    wqkv = jnp.concatenate([wq, wk, wv], axis=1)            # (HID, 3*HID) fused QKV
    bqkv = jnp.concatenate([bq, bk, bv], axis=1)            # (1, 3*HID)
    x2 = x.reshape(Bsz * N, E).astype(MXU_DTYPE)            # row-stacked batches
    mask2 = mask.astype(jnp.float32).reshape(Bsz * N, 1)    # per-token mask column

    args = (x2, mask2,
            emb_w.astype(MXU_DTYPE), emb_b,
            wqkv.astype(MXU_DTYPE), bqkv,
            wd.astype(MXU_DTYPE), bd, g1, bt1,
            wf.astype(MXU_DTYPE), bf,
            wo.astype(MXU_DTYPE), bo, g2, bt2)

    per_layer_flops = (2 * (Bsz * N) * hid * 3 * hid                 # fused QKV
                       + Bsz * 2 * N * hid * (hid + 1)               # ctx + key-sum
                       + Bsz * 2 * N * hid * 2 * hid                 # fused num/denom
                       + 2 * (Bsz * N) * hid * hid                   # attention dense
                       + 4 * (Bsz * N) * hid * inter)                # ffn + ffn_output
    flops = 2 * (Bsz * N) * E * hid + NUM_HIDDEN_LAYERS * per_layer_flops
    transcendentals = NUM_HIDDEN_LAYERS * Bsz * N * (3 * hid + inter)
    bytes_accessed = int(sum(a.size * a.dtype.itemsize for a in args)
                         + Bsz * N * hid * 4)

    vmem = pltpu.MemorySpace.VMEM
    out = pl.pallas_call(
        oskar_forward_kernel,
        out_shape=jax.ShapeDtypeStruct((Bsz * N, hid), jnp.float32),
        in_specs=[pl.BlockSpec(memory_space=vmem) for _ in args],   # whole arrays resident
        out_specs=pl.BlockSpec(memory_space=vmem),
        cost_estimate=pl.CostEstimate(flops=flops,
                                      transcendentals=transcendentals,
                                      bytes_accessed=bytes_accessed),
    )(*args)
    return out.reshape(Bsz, N, hid)


# ---------------- pure-JAX reference (PyTorch semantics, f32) ----------------

_PREC = jax.lax.Precision.HIGHEST


def _ref_layer(h, mask, p):
    wq, bq, wk, bk, wv, bv, wd, bd, g1, bt1, wf, bf, wo, bo, g2, bt2 = p
    Bh, Nh, _ = h.shape

    def split(z):
        return z.reshape(Bh, Nh, HEADS, HEAD_DIM).transpose(0, 2, 1, 3)

    q = split(jnp.dot(h, wq, precision=_PREC) + bq[0])
    k = split(jnp.dot(h, wk, precision=_PREC) + bk[0])
    v = split(jnp.dot(h, wv, precision=_PREC) + bv[0])
    q = _elu_plus_one(q)
    k = _elu_plus_one(k)
    k = k * mask[:, None, :, None]
    d_inv = 1.0 / jnp.einsum('bhnd,bhd->bhn', q, k.sum(axis=2), precision=_PREC)
    ctx = jnp.einsum('bhnd,bhne->bhde', k, v, precision=_PREC)
    cl = jnp.einsum('bhde,bhnd,bhn->bhne', ctx, q, d_inv, precision=_PREC)
    cl = cl.transpose(0, 2, 1, 3).reshape(Bh, Nh, HID)
    attn = _layernorm(h + jnp.dot(cl, wd, precision=_PREC) + bd[0], g1[0], bt1[0])
    f = jax.nn.gelu(jnp.dot(attn, wf, precision=_PREC) + bf[0], approximate=True)
    f = jnp.dot(f, wo, precision=_PREC) + bo[0]
    return _layernorm(f + attn, g2[0], bt2[0])


def reference(x, mask, emb_w, emb_b, p):
    h = jnp.dot(x, emb_w, precision=_PREC) + emb_b[0]
    for _ in range(NUM_HIDDEN_LAYERS):
        h = _ref_layer(h, mask, p)
    return h


# ---------------- deterministic parameter init ----------------


def init_params(key):
    ks = jax.random.split(key, 10)

    def W(k, fi, fo):
        return 0.02 * jax.random.normal(k, (fi, fo), jnp.float32)

    def bias(k, dim):
        return 0.01 * jax.random.normal(k, (1, dim), jnp.float32)

    emb_w = W(ks[0], EMB, HID)
    emb_b = bias(ks[1], HID)
    layer_params = (
        W(ks[2], HID, HID), bias(ks[2], HID),      # query
        W(ks[3], HID, HID), bias(ks[3], HID),      # key
        W(ks[4], HID, HID), bias(ks[4], HID),      # value
        W(ks[5], HID, HID), bias(ks[5], HID),      # attention dense
        jnp.ones((1, HID), jnp.float32), jnp.zeros((1, HID), jnp.float32),   # attn LN
        W(ks[6], HID, INTER), bias(ks[6], INTER),  # ffn
        W(ks[7], INTER, HID), bias(ks[7], HID),    # ffn_output
        jnp.ones((1, HID), jnp.float32), jnp.zeros((1, HID), jnp.float32),   # full LN
    )
    return emb_w, emb_b, layer_params


if __name__ == "__main__":
    key = jax.random.PRNGKey(0)
    k_x, k_p = jax.random.split(key)
    x = jax.random.normal(k_x, (B, SEQ, EMB), jnp.float32)
    mask = jnp.ones((B, SEQ), jnp.float32).at[:, -1].set(0.0)  # last token masked
    emb_w, emb_b, layer_params = init_params(k_p)

    out = oskar_transformer(x, mask, emb_w, emb_b, layer_params)
    out = jax.block_until_ready(out)

    ref = reference(x, mask, emb_w, emb_b, layer_params)
    tol = 5e-2   # bf16 MXU operands (f32 accumulation)
    err = float(jnp.max(jnp.abs(out - ref)))
    assert out.shape == (B, SEQ, HID)
    assert err < tol, err
    print("KERNEL_OK")
</pallas_src>

<mosaic_0001>
module attributes {stable_mosaic.version = 11 : i64} {
  func.func @oskar_forward_kernel(%arg0: memref<16x32xbf16, #tpu.memory_space<vmem>>, %arg1: memref<16x1xf32, #tpu.memory_space<vmem>>, %arg2: memref<32x32xbf16, #tpu.memory_space<vmem>>, %arg3: memref<1x32xf32, #tpu.memory_space<vmem>>, %arg4: memref<32x96xbf16, #tpu.memory_space<vmem>>, %arg5: memref<1x96xf32, #tpu.memory_space<vmem>>, %arg6: memref<32x32xbf16, #tpu.memory_space<vmem>>, %arg7: memref<1x32xf32, #tpu.memory_space<vmem>>, %arg8: memref<1x32xf32, #tpu.memory_space<vmem>>, %arg9: memref<1x32xf32, #tpu.memory_space<vmem>>, %arg10: memref<32x64xbf16, #tpu.memory_space<vmem>>, %arg11: memref<1x64xf32, #tpu.memory_space<vmem>>, %arg12: memref<64x32xbf16, #tpu.memory_space<vmem>>, %arg13: memref<1x32xf32, #tpu.memory_space<vmem>>, %arg14: memref<1x32xf32, #tpu.memory_space<vmem>>, %arg15: memref<1x32xf32, #tpu.memory_space<vmem>>, %arg16: memref<16x32xf32, #tpu.memory_space<vmem>>) attributes {dimension_semantics = [], scalar_prefetch = 0 : i64, scratch_operands = 0 : i64, tpu.core_type = #tpu.core_type<tc>} {
    %c0 = arith.constant 0 : index
    %c0_0 = arith.constant 0 : index
    %0 = vector.load %arg0[%c0, %c0_0] : memref<16x32xbf16, #tpu.memory_space<vmem>>, vector<16x32xbf16>
    %c0_1 = arith.constant 0 : index
    %c0_2 = arith.constant 0 : index
    %1 = vector.load %arg1[%c0_1, %c0_2] : memref<16x1xf32, #tpu.memory_space<vmem>>, vector<16x1xf32>
    %2 = tpu.iota {dimensions = array<i32: 0>} : vector<32x32xi32>
    %3 = tpu.iota {dimensions = array<i32: 1>} : vector<32x32xi32>
    %c3_i32 = arith.constant 3 : i32
    %4 = vector.broadcast %c3_i32 : i32 to vector<32x32xi32>
    %5 = arith.shrsi %2, %4 : vector<32x32xi32>
    %c3_i32_3 = arith.constant 3 : i32
    %6 = vector.broadcast %c3_i32_3 : i32 to vector<32x32xi32>
    %7 = arith.shrsi %3, %6 : vector<32x32xi32>
    %8 = arith.cmpi eq, %5, %7 : vector<32x32xi32>
    %9 = arith.extui %8 : vector<32x32xi1> to vector<32x32xi32>
    %10 = arith.sitofp %9 : vector<32x32xi32> to vector<32x32xf32>
    %c0_4 = arith.constant 0 : index
    %c0_5 = arith.constant 0 : index
    %11 = vector.load %arg2[%c0_4, %c0_5] : memref<32x32xbf16, #tpu.memory_space<vmem>>, vector<32x32xbf16>
    %c0_6 = arith.constant 0 : index
    %c0_7 = arith.constant 0 : index
    %12 = vector.load %arg3[%c0_6, %c0_7] : memref<1x32xf32, #tpu.memory_space<vmem>>, vector<1x32xf32>
    %c0_8 = arith.constant 0 : index
    %c0_9 = arith.constant 0 : index
    %13 = vector.load %arg4[%c0_8, %c0_9] : memref<32x96xbf16, #tpu.memory_space<vmem>>, vector<32x96xbf16>
    %c0_10 = arith.constant 0 : index
    %c0_11 = arith.constant 0 : index
    %14 = vector.load %arg5[%c0_10, %c0_11] : memref<1x96xf32, #tpu.memory_space<vmem>>, vector<1x96xf32>
    %c0_12 = arith.constant 0 : index
    %c0_13 = arith.constant 0 : index
    %15 = vector.load %arg6[%c0_12, %c0_13] : memref<32x32xbf16, #tpu.memory_space<vmem>>, vector<32x32xbf16>
    %c0_14 = arith.constant 0 : index
    %c0_15 = arith.constant 0 : index
    %16 = vector.load %arg7[%c0_14, %c0_15] : memref<1x32xf32, #tpu.memory_space<vmem>>, vector<1x32xf32>
    %c0_16 = arith.constant 0 : index
    %c0_17 = arith.constant 0 : index
    %17 = vector.load %arg8[%c0_16, %c0_17] : memref<1x32xf32, #tpu.memory_space<vmem>>, vector<1x32xf32>
    %c0_18 = arith.constant 0 : index
    %c0_19 = arith.constant 0 : index
    %18 = vector.load %arg9[%c0_18, %c0_19] : memref<1x32xf32, #tpu.memory_space<vmem>>, vector<1x32xf32>
    %c0_20 = arith.constant 0 : index
    %c0_21 = arith.constant 0 : index
    %19 = vector.load %arg10[%c0_20, %c0_21] : memref<32x64xbf16, #tpu.memory_space<vmem>>, vector<32x64xbf16>
    %c0_22 = arith.constant 0 : index
    %c0_23 = arith.constant 0 : index
    %20 = vector.load %arg11[%c0_22, %c0_23] : memref<1x64xf32, #tpu.memory_space<vmem>>, vector<1x64xf32>
    %c0_24 = arith.constant 0 : index
    %c0_25 = arith.constant 0 : index
    %21 = vector.load %arg12[%c0_24, %c0_25] : memref<64x32xbf16, #tpu.memory_space<vmem>>, vector<64x32xbf16>
    %c0_26 = arith.constant 0 : index
    %c0_27 = arith.constant 0 : index
    %22 = vector.load %arg13[%c0_26, %c0_27] : memref<1x32xf32, #tpu.memory_space<vmem>>, vector<1x32xf32>
    %c0_28 = arith.constant 0 : index
    %c0_29 = arith.constant 0 : index
    %23 = vector.load %arg14[%c0_28, %c0_29] : memref<1x32xf32, #tpu.memory_space<vmem>>, vector<1x32xf32>
    %c0_30 = arith.constant 0 : index
    %c0_31 = arith.constant 0 : index
    %24 = vector.load %arg15[%c0_30, %c0_31] : memref<1x32xf32, #tpu.memory_space<vmem>>, vector<1x32xf32>
    %cst = arith.constant 1.000000e+00 : bf16
    %25 = vector.broadcast %cst : bf16 to vector<8x1xbf16>
    %cst_32 = arith.constant dense<0.000000e+00> : vector<16x32xf32>
    %26 = tpu.matmul %0, %11, %cst_32 {dimension_numbers = #tpu.dot_dimension_numbers<[1], [0], [0], [1], [0, 0, 1, 1], [], []>} : vector<16x32xbf16>, vector<32x32xbf16>, vector<16x32xf32> -> vector<16x32xf32>
    %27 = vector.broadcast %12 : vector<1x32xf32> to vector<16x32xf32>
    %28 = arith.addf %26, %27 : vector<16x32xf32>
    %c0_i32 = arith.constant 0 : i32
    %29 = arith.truncf %28 : vector<16x32xf32> to vector<16x32xbf16>
    %cst_33 = arith.constant dense<0.000000e+00> : vector<16x96xf32>
    %30 = tpu.matmul %29, %13, %cst_33 {dimension_numbers = #tpu.dot_dimension_numbers<[1], [0], [0], [1], [0, 0, 1, 1], [], []>} : vector<16x32xbf16>, vector<32x96xbf16>, vector<16x96xf32> -> vector<16x96xf32>
    %31 = vector.broadcast %14 : vector<1x96xf32> to vector<16x96xf32>
    %32 = arith.addf %30, %31 : vector<16x96xf32>
    %33 = vector.extract_strided_slice %32 {offsets = [0, 0], sizes = [16, 32], strides = [1, 1]} : vector<16x96xf32> to vector<16x32xf32>
    %cst_34 = arith.constant 0.000000e+00 : f32
    %34 = vector.broadcast %cst_34 : f32 to vector<16x32xf32>
    %35 = arith.cmpf ogt, %33, %34 : vector<16x32xf32>
    %cst_35 = arith.constant 1.000000e+00 : f32
    %36 = vector.broadcast %cst_35 : f32 to vector<16x32xf32>
    %37 = arith.addf %33, %36 : vector<16x32xf32>
    %38 = math.exp %33 : vector<16x32xf32>
    %39 = arith.select %35, %37, %38 : vector<16x32xi1>, vector<16x32xf32>
    %40 = vector.extract_strided_slice %32 {offsets = [0, 32], sizes = [16, 32], strides = [1, 1]} : vector<16x96xf32> to vector<16x32xf32>
    %cst_36 = arith.constant 0.000000e+00 : f32
    %41 = vector.broadcast %cst_36 : f32 to vector<16x32xf32>
    %42 = arith.cmpf ogt, %40, %41 : vector<16x32xf32>
    %cst_37 = arith.constant 1.000000e+00 : f32
    %43 = vector.broadcast %cst_37 : f32 to vector<16x32xf32>
    %44 = arith.addf %40, %43 : vector<16x32xf32>
    %45 = math.exp %40 : vector<16x32xf32>
    %46 = arith.select %42, %44, %45 : vector<16x32xi1>, vector<16x32xf32>
    %47 = vector.broadcast %1 : vector<16x1xf32> to vector<16x32xf32>
    %48 = arith.mulf %46, %47 : vector<16x32xf32>
    %49 = vector.extract_strided_slice %32 {offsets = [0, 64], sizes = [16, 32], strides = [1, 1]} : vector<16x96xf32> to vector<16x32xf32>
    %50 = arith.truncf %48 : vector<16x32xf32> to vector<16x32xbf16>
    %51 = arith.truncf %49 : vector<16x32xf32> to vector<16x32xbf16>
    %52 = arith.truncf %39 : vector<16x32xf32> to vector<16x32xbf16>
    %53 = vector.extract_strided_slice %50 {offsets = [0, 0], sizes = [8, 32], strides = [1, 1]} : vector<16x32xbf16> to vector<8x32xbf16>
    %54 = vector.extract_strided_slice %52 {offsets = [0, 0], sizes = [8, 32], strides = [1, 1]} : vector<16x32xbf16> to vector<8x32xbf16>
    %55 = vector.extract_strided_slice %51 {offsets = [0, 0], sizes = [8, 32], strides = [1, 1]} : vector<16x32xbf16> to vector<8x32xbf16>
    %56 = tpu.concatenate %55, %25 in 1 : vector<8x32xbf16>, vector<8x1xbf16> -> vector<8x33xbf16>
    "tpu.trace_start"() <{level = 10 : i32, message = "nd,ne->de"}> : () -> ()
    %cst_38 = arith.constant dense<0.000000e+00> : vector<32x33xf32>
    %57 = tpu.matmul %53, %56, %cst_38 {dimension_numbers = #tpu.dot_dimension_numbers<[0], [0], [1], [1], [0, 1, 1, 1], [], []>} : vector<8x32xbf16>, vector<8x33xbf16>, vector<32x33xf32> -> vector<32x33xf32>
    "tpu.trace_stop"() : () -> ()
    %58 = vector.extract_strided_slice %57 {offsets = [0, 0], sizes = [32, 32], strides = [1, 1]} : vector<32x33xf32> to vector<32x32xf32>
    %59 = arith.mulf %58, %10 : vector<32x32xf32>
    %60 = vector.extract_strided_slice %57 {offsets = [0, 32], sizes = [32, 1], strides = [1, 1]} : vector<32x33xf32> to vector<32x1xf32>
    %61 = vector.broadcast %60 : vector<32x1xf32> to vector<32x32xf32>
    %62 = arith.mulf %61, %10 : vector<32x32xf32>
    %63 = tpu.concatenate %59, %62 in 1 : vector<32x32xf32>, vector<32x32xf32> -> vector<32x64xf32>
    %64 = arith.truncf %63 : vector<32x64xf32> to vector<32x64xbf16>
    %cst_39 = arith.constant dense<0.000000e+00> : vector<8x64xf32>
    %65 = tpu.matmul %54, %64, %cst_39 {dimension_numbers = #tpu.dot_dimension_numbers<[1], [0], [0], [1], [0, 0, 1, 1], [], []>} : vector<8x32xbf16>, vector<32x64xbf16>, vector<8x64xf32> -> vector<8x64xf32>
    %66 = vector.extract_strided_slice %65 {offsets = [0, 0], sizes = [8, 32], strides = [1, 1]} : vector<8x64xf32> to vector<8x32xf32>
    %67 = vector.extract_strided_slice %65 {offsets = [0, 32], sizes = [8, 32], strides = [1, 1]} : vector<8x64xf32> to vector<8x32xf32>
    %68 = tpu.reciprocal %67 {approx = true} : vector<8x32xf32> -> vector<8x32xf32>
    %69 = arith.mulf %66, %68 : vector<8x32xf32>
    %70 = vector.extract_strided_slice %50 {offsets = [8, 0], sizes = [8, 32], strides = [1, 1]} : vector<16x32xbf16> to vector<8x32xbf16>
    %71 = vector.extract_strided_slice %52 {offsets = [8, 0], sizes = [8, 32], strides = [1, 1]} : vector<16x32xbf16> to vector<8x32xbf16>
    %72 = vector.extract_strided_slice %51 {offsets = [8, 0], sizes = [8, 32], strides = [1, 1]} : vector<16x32xbf16> to vector<8x32xbf16>
    %73 = tpu.concatenate %72, %25 in 1 : vector<8x32xbf16>, vector<8x1xbf16> -> vector<8x33xbf16>
    "tpu.trace_start"() <{level = 10 : i32, message = "nd,ne->de"}> : () -> ()
    %cst_40 = arith.constant dense<0.000000e+00> : vector<32x33xf32>
    %74 = tpu.matmul %70, %73, %cst_40 {dimension_numbers = #tpu.dot_dimension_numbers<[0], [0], [1], [1], [0, 1, 1, 1], [], []>} : vector<8x32xbf16>, vector<8x33xbf16>, vector<32x33xf32> -> vector<32x33xf32>
    "tpu.trace_stop"() : () -> ()
    %75 = vector.extract_strided_slice %74 {offsets = [0, 0], sizes = [32, 32], strides = [1, 1]} : vector<32x33xf32> to vector<32x32xf32>
    %76 = arith.mulf %75, %10 : vector<32x32xf32>
    %77 = vector.extract_strided_slice %74 {offsets = [0, 32], sizes = [32, 1], strides = [1, 1]} : vector<32x33xf32> to vector<32x1xf32>
    %78 = vector.broadcast %77 : vector<32x1xf32> to vector<32x32xf32>
    %79 = arith.mulf %78, %10 : vector<32x32xf32>
    %80 = tpu.concatenate %76, %79 in 1 : vector<32x32xf32>, vector<32x32xf32> -> vector<32x64xf32>
    %81 = arith.truncf %80 : vector<32x64xf32> to vector<32x64xbf16>
    %cst_41 = arith.constant dense<0.000000e+00> : vector<8x64xf32>
    %82 = tpu.matmul %71, %81, %cst_41 {dimension_numbers = #tpu.dot_dimension_numbers<[1], [0], [0], [1], [0, 0, 1, 1], [], []>} : vector<8x32xbf16>, vector<32x64xbf16>, vector<8x64xf32> -> vector<8x64xf32>
    %83 = vector.extract_strided_slice %82 {offsets = [0, 0], sizes = [8, 32], strides = [1, 1]} : vector<8x64xf32> to vector<8x32xf32>
    %84 = vector.extract_strided_slice %82 {offsets = [0, 32], sizes = [8, 32], strides = [1, 1]} : vector<8x64xf32> to vector<8x32xf32>
    %85 = tpu.reciprocal %84 {approx = true} : vector<8x32xf32> -> vector<8x32xf32>
    %86 = arith.mulf %83, %85 : vector<8x32xf32>
    %87 = tpu.concatenate %69, %86 in 0 : vector<8x32xf32>, vector<8x32xf32> -> vector<16x32xf32>
    %88 = arith.truncf %87 : vector<16x32xf32> to vector<16x32xbf16>
    %cst_42 = arith.constant dense<0.000000e+00> : vector<16x32xf32>
    %89 = tpu.matmul %88, %15, %cst_42 {dimension_numbers = #tpu.dot_dimension_numbers<[1], [0], [0], [1], [0, 0, 1, 1], [], []>} : vector<16x32xbf16>, vector<32x32xbf16>, vector<16x32xf32> -> vector<16x32xf32>
    %90 = vector.broadcast %16 : vector<1x32xf32> to vector<16x32xf32>
    %91 = arith.addf %89, %90 : vector<16x32xf32>
    %92 = arith.addf %28, %91 : vector<16x32xf32>
    %cst_43 = arith.constant dense<0.000000e+00> : vector<16xf32>
    %93 = vector.multi_reduction <add>, %92, %cst_43 [1] : vector<16x32xf32> to vector<16xf32>
    %94 = vector.shape_cast %93 : vector<16xf32> to vector<16x1xf32>
    %cst_44 = arith.constant 3.200000e+01 : f32
    %95 = vector.broadcast %cst_44 : f32 to vector<16x1xf32>
    %96 = arith.divf %94, %95 : vector<16x1xf32>
    %97 = vector.broadcast %96 : vector<16x1xf32> to vector<16x32xf32>
    %98 = arith.subf %92, %97 : vector<16x32xf32>
    %99 = arith.mulf %98, %98 : vector<16x32xf32>
    %cst_45 = arith.constant dense<0.000000e+00> : vector<16xf32>
    %100 = vector.multi_reduction <add>, %99, %cst_45 [1] : vector<16x32xf32> to vector<16xf32>
    %101 = vector.shape_cast %100 : vector<16xf32> to vector<16x1xf32>
    %cst_46 = arith.constant 3.200000e+01 : f32
    %102 = vector.broadcast %cst_46 : f32 to vector<16x1xf32>
    %103 = arith.divf %101, %102 : vector<16x1xf32>
    %cst_47 = arith.constant 9.99999996E-13 : f32
    %104 = vector.broadcast %cst_47 : f32 to vector<16x1xf32>
    %105 = arith.addf %103, %104 : vector<16x1xf32>
    %106 = math.rsqrt %105 : vector<16x1xf32>
    %107 = vector.broadcast %106 : vector<16x1xf32> to vector<16x32xf32>
    %108 = arith.mulf %98, %107 : vector<16x32xf32>
    %109 = vector.broadcast %17 : vector<1x32xf32> to vector<16x32xf32>
    %110 = arith.mulf %108, %109 : vector<16x32xf32>
    %111 = vector.broadcast %18 : vector<1x32xf32> to vector<16x32xf32>
    %112 = arith.addf %110, %111 : vector<16x32xf32>
    %113 = arith.truncf %112 : vector<16x32xf32> to vector<16x32xbf16>
    %cst_48 = arith.constant dense<0.000000e+00> : vector<16x64xf32>
    %114 = tpu.matmul %113, %19, %cst_48 {dimension_numbers = #tpu.dot_dimension_numbers<[1], [0], [0], [1], [0, 0, 1, 1], [], []>} : vector<16x32xbf16>, vector<32x64xbf16>, vector<16x64xf32> -> vector<16x64xf32>
    %115 = vector.broadcast %20 : vector<1x64xf32> to vector<16x64xf32>
    %116 = arith.addf %114, %115 : vector<16x64xf32>
    %117 = arith.mulf %116, %116 : vector<16x64xf32>
    %118 = arith.mulf %116, %117 : vector<16x64xf32>
    %cst_49 = arith.constant 4.471500e-02 : f32
    %119 = vector.broadcast %cst_49 : f32 to vector<16x64xf32>
    %120 = arith.mulf %119, %118 : vector<16x64xf32>
    %121 = arith.addf %116, %120 : vector<16x64xf32>
    %cst_50 = arith.constant 0.797884583 : f32
    %122 = vector.broadcast %cst_50 : f32 to vector<16x64xf32>
    %123 = arith.mulf %122, %121 : vector<16x64xf32>
    %124 = math.tanh %123 : vector<16x64xf32>
    %cst_51 = arith.constant 1.000000e+00 : f32
    %125 = vector.broadcast %cst_51 : f32 to vector<16x64xf32>
    %126 = arith.addf %125, %124 : vector<16x64xf32>
    %cst_52 = arith.constant 5.000000e-01 : f32
    %127 = vector.broadcast %cst_52 : f32 to vector<16x64xf32>
    %128 = arith.mulf %127, %126 : vector<16x64xf32>
    %129 = arith.mulf %116, %128 : vector<16x64xf32>
    %130 = arith.truncf %129 : vector<16x64xf32> to vector<16x64xbf16>
    %cst_53 = arith.constant dense<0.000000e+00> : vector<16x32xf32>
    %131 = tpu.matmul %130, %21, %cst_53 {dimension_numbers = #tpu.dot_dimension_numbers<[1], [0], [0], [1], [0, 0, 1, 1], [], []>} : vector<16x64xbf16>, vector<64x32xbf16>, vector<16x32xf32> -> vector<16x32xf32>
    %132 = vector.broadcast %22 : vector<1x32xf32> to vector<16x32xf32>
    %133 = arith.addf %131, %132 : vector<16x32xf32>
    %134 = arith.addf %133, %112 : vector<16x32xf32>
    %cst_54 = arith.constant dense<0.000000e+00> : vector<16xf32>
    %135 = vector.multi_reduction <add>, %134, %cst_54 [1] : vector<16x32xf32> to vector<16xf32>
    %136 = vector.shape_cast %135 : vector<16xf32> to vector<16x1xf32>
    %cst_55 = arith.constant 3.200000e+01 : f32
    %137 = vector.broadcast %cst_55 : f32 to vector<16x1xf32>
    %138 = arith.divf %136, %137 : vector<16x1xf32>
    %139 = vector.broadcast %138 : vector<16x1xf32> to vector<16x32xf32>
    %140 = arith.subf %134, %139 : vector<16x32xf32>
    %141 = arith.mulf %140, %140 : vector<16x32xf32>
    %cst_56 = arith.constant dense<0.000000e+00> : vector<16xf32>
    %142 = vector.multi_reduction <add>, %141, %cst_56 [1] : vector<16x32xf32> to vector<16xf32>
    %143 = vector.shape_cast %142 : vector<16xf32> to vector<16x1xf32>
    %cst_57 = arith.constant 3.200000e+01 : f32
    %144 = vector.broadcast %cst_57 : f32 to vector<16x1xf32>
    %145 = arith.divf %143, %144 : vector<16x1xf32>
    %cst_58 = arith.constant 9.99999996E-13 : f32
    %146 = vector.broadcast %cst_58 : f32 to vector<16x1xf32>
    %147 = arith.addf %145, %146 : vector<16x1xf32>
    %148 = math.rsqrt %147 : vector<16x1xf32>
    %149 = vector.broadcast %148 : vector<16x1xf32> to vector<16x32xf32>
    %150 = arith.mulf %140, %149 : vector<16x32xf32>
    %151 = vector.broadcast %23 : vector<1x32xf32> to vector<16x32xf32>
    %152 = arith.mulf %150, %151 : vector<16x32xf32>
    %153 = vector.broadcast %24 : vector<1x32xf32> to vector<16x32xf32>
    %154 = arith.addf %152, %153 : vector<16x32xf32>
    %c1_i32 = arith.constant 1 : i32
    %155 = arith.truncf %154 : vector<16x32xf32> to vector<16x32xbf16>
    %cst_59 = arith.constant dense<0.000000e+00> : vector<16x96xf32>
    %156 = tpu.matmul %155, %13, %cst_59 {dimension_numbers = #tpu.dot_dimension_numbers<[1], [0], [0], [1], [0, 0, 1, 1], [], []>} : vector<16x32xbf16>, vector<32x96xbf16>, vector<16x96xf32> -> vector<16x96xf32>
    %157 = vector.broadcast %14 : vector<1x96xf32> to vector<16x96xf32>
    %158 = arith.addf %156, %157 : vector<16x96xf32>
    %159 = vector.extract_strided_slice %158 {offsets = [0, 0], sizes = [16, 32], strides = [1, 1]} : vector<16x96xf32> to vector<16x32xf32>
    %cst_60 = arith.constant 0.000000e+00 : f32
    %160 = vector.broadcast %cst_60 : f32 to vector<16x32xf32>
    %161 = arith.cmpf ogt, %159, %160 : vector<16x32xf32>
    %cst_61 = arith.constant 1.000000e+00 : f32
    %162 = vector.broadcast %cst_61 : f32 to vector<16x32xf32>
    %163 = arith.addf %159, %162 : vector<16x32xf32>
    %164 = math.exp %159 : vector<16x32xf32>
    %165 = arith.select %161, %163, %164 : vector<16x32xi1>, vector<16x32xf32>
    %166 = vector.extract_strided_slice %158 {offsets = [0, 32], sizes = [16, 32], strides = [1, 1]} : vector<16x96xf32> to vector<16x32xf32>
    %cst_62 = arith.constant 0.000000e+00 : f32
    %167 = vector.broadcast %cst_62 : f32 to vector<16x32xf32>
    %168 = arith.cmpf ogt, %166, %167 : vector<16x32xf32>
    %cst_63 = arith.constant 1.000000e+00 : f32
    %169 = vector.broadcast %cst_63 : f32 to vector<16x32xf32>
    %170 = arith.addf %166, %169 : vector<16x32xf32>
    %171 = math.exp %166 : vector<16x32xf32>
    %172 = arith.select %168, %170, %171 : vector<16x32xi1>, vector<16x32xf32>
    %173 = vector.broadcast %1 : vector<16x1xf32> to vector<16x32xf32>
    %174 = arith.mulf %172, %173 : vector<16x32xf32>
    %175 = vector.extract_strided_slice %158 {offsets = [0, 64], sizes = [16, 32], strides = [1, 1]} : vector<16x96xf32> to vector<16x32xf32>
    %176 = arith.truncf %174 : vector<16x32xf32> to vector<16x32xbf16>
    %177 = arith.truncf %175 : vector<16x32xf32> to vector<16x32xbf16>
    %178 = arith.truncf %165 : vector<16x32xf32> to vector<16x32xbf16>
    %179 = vector.extract_strided_slice %176 {offsets = [0, 0], sizes = [8, 32], strides = [1, 1]} : vector<16x32xbf16> to vector<8x32xbf16>
    %180 = vector.extract_strided_slice %178 {offsets = [0, 0], sizes = [8, 32], strides = [1, 1]} : vector<16x32xbf16> to vector<8x32xbf16>
    %181 = vector.extract_strided_slice %177 {offsets = [0, 0], sizes = [8, 32], strides = [1, 1]} : vector<16x32xbf16> to vector<8x32xbf16>
    %182 = tpu.concatenate %181, %25 in 1 : vector<8x32xbf16>, vector<8x1xbf16> -> vector<8x33xbf16>
    "tpu.trace_start"() <{level = 10 : i32, message = "nd,ne->de"}> : () -> ()
    %cst_64 = arith.constant dense<0.000000e+00> : vector<32x33xf32>
    %183 = tpu.matmul %179, %182, %cst_64 {dimension_numbers = #tpu.dot_dimension_numbers<[0], [0], [1], [1], [0, 1, 1, 1], [], []>} : vector<8x32xbf16>, vector<8x33xbf16>, vector<32x33xf32> -> vector<32x33xf32>
    "tpu.trace_stop"() : () -> ()
    %184 = vector.extract_strided_slice %183 {offsets = [0, 0], sizes = [32, 32], strides = [1, 1]} : vector<32x33xf32> to vector<32x32xf32>
    %185 = arith.mulf %184, %10 : vector<32x32xf32>
    %186 = vector.extract_strided_slice %183 {offsets = [0, 32], sizes = [32, 1], strides = [1, 1]} : vector<32x33xf32> to vector<32x1xf32>
    %187 = vector.broadcast %186 : vector<32x1xf32> to vector<32x32xf32>
    %188 = arith.mulf %187, %10 : vector<32x32xf32>
    %189 = tpu.concatenate %185, %188 in 1 : vector<32x32xf32>, vector<32x32xf32> -> vector<32x64xf32>
    %190 = arith.truncf %189 : vector<32x64xf32> to vector<32x64xbf16>
    %cst_65 = arith.constant dense<0.000000e+00> : vector<8x64xf32>
    %191 = tpu.matmul %180, %190, %cst_65 {dimension_numbers = #tpu.dot_dimension_numbers<[1], [0], [0], [1], [0, 0, 1, 1], [], []>} : vector<8x32xbf16>, vector<32x64xbf16>, vector<8x64xf32> -> vector<8x64xf32>
    %192 = vector.extract_strided_slice %191 {offsets = [0, 0], sizes = [8, 32], strides = [1, 1]} : vector<8x64xf32> to vector<8x32xf32>
    %193 = vector.extract_strided_slice %191 {offsets = [0, 32], sizes = [8, 32], strides = [1, 1]} : vector<8x64xf32> to vector<8x32xf32>
    %194 = tpu.reciprocal %193 {approx = true} : vector<8x32xf32> -> vector<8x32xf32>
    %195 = arith.mulf %192, %194 : vector<8x32xf32>
    %196 = vector.extract_strided_slice %176 {offsets = [8, 0], sizes = [8, 32], strides = [1, 1]} : vector<16x32xbf16> to vector<8x32xbf16>
    %197 = vector.extract_strided_slice %178 {offsets = [8, 0], sizes = [8, 32], strides = [1, 1]} : vector<16x32xbf16> to vector<8x32xbf16>
    %198 = vector.extract_strided_slice %177 {offsets = [8, 0], sizes = [8, 32], strides = [1, 1]} : vector<16x32xbf16> to vector<8x32xbf16>
    %199 = tpu.concatenate %198, %25 in 1 : vector<8x32xbf16>, vector<8x1xbf16> -> vector<8x33xbf16>
    "tpu.trace_start"() <{level = 10 : i32, message = "nd,ne->de"}> : () -> ()
    %cst_66 = arith.constant dense<0.000000e+00> : vector<32x33xf32>
    %200 = tpu.matmul %196, %199, %cst_66 {dimension_numbers = #tpu.dot_dimension_numbers<[0], [0], [1], [1], [0, 1, 1, 1], [], []>} : vector<8x32xbf16>, vector<8x33xbf16>, vector<32x33xf32> -> vector<32x33xf32>
    "tpu.trace_stop"() : () -> ()
    %201 = vector.extract_strided_slice %200 {offsets = [0, 0], sizes = [32, 32], strides = [1, 1]} : vector<32x33xf32> to vector<32x32xf32>
    %202 = arith.mulf %201, %10 : vector<32x32xf32>
    %203 = vector.extract_strided_slice %200 {offsets = [0, 32], sizes = [32, 1], strides = [1, 1]} : vector<32x33xf32> to vector<32x1xf32>
    %204 = vector.broadcast %203 : vector<32x1xf32> to vector<32x32xf32>
    %205 = arith.mulf %204, %10 : vector<32x32xf32>
    %206 = tpu.concatenate %202, %205 in 1 : vector<32x32xf32>, vector<32x32xf32> -> vector<32x64xf32>
    %207 = arith.truncf %206 : vector<32x64xf32> to vector<32x64xbf16>
    %cst_67 = arith.constant dense<0.000000e+00> : vector<8x64xf32>
    %208 = tpu.matmul %197, %207, %cst_67 {dimension_numbers = #tpu.dot_dimension_numbers<[1], [0], [0], [1], [0, 0, 1, 1], [], []>} : vector<8x32xbf16>, vector<32x64xbf16>, vector<8x64xf32> -> vector<8x64xf32>
    %209 = vector.extract_strided_slice %208 {offsets = [0, 0], sizes = [8, 32], strides = [1, 1]} : vector<8x64xf32> to vector<8x32xf32>
    %210 = vector.extract_strided_slice %208 {offsets = [0, 32], sizes = [8, 32], strides = [1, 1]} : vector<8x64xf32> to vector<8x32xf32>
    %211 = tpu.reciprocal %210 {approx = true} : vector<8x32xf32> -> vector<8x32xf32>
    %212 = arith.mulf %209, %211 : vector<8x32xf32>
    %213 = tpu.concatenate %195, %212 in 0 : vector<8x32xf32>, vector<8x32xf32> -> vector<16x32xf32>
    %214 = arith.truncf %213 : vector<16x32xf32> to vector<16x32xbf16>
    %cst_68 = arith.constant dense<0.000000e+00> : vector<16x32xf32>
    %215 = tpu.matmul %214, %15, %cst_68 {dimension_numbers = #tpu.dot_dimension_numbers<[1], [0], [0], [1], [0, 0, 1, 1], [], []>} : vector<16x32xbf16>, vector<32x32xbf16>, vector<16x32xf32> -> vector<16x32xf32>
    %216 = vector.broadcast %16 : vector<1x32xf32> to vector<16x32xf32>
    %217 = arith.addf %215, %216 : vector<16x32xf32>
    %218 = arith.addf %154, %217 : vector<16x32xf32>
    %cst_69 = arith.constant dense<0.000000e+00> : vector<16xf32>
    %219 = vector.multi_reduction <add>, %218, %cst_69 [1] : vector<16x32xf32> to vector<16xf32>
    %220 = vector.shape_cast %219 : vector<16xf32> to vector<16x1xf32>
    %cst_70 = arith.constant 3.200000e+01 : f32
    %221 = vector.broadcast %cst_70 : f32 to vector<16x1xf32>
    %222 = arith.divf %220, %221 : vector<16x1xf32>
    %223 = vector.broadcast %222 : vector<16x1xf32> to vector<16x32xf32>
    %224 = arith.subf %218, %223 : vector<16x32xf32>
    %225 = arith.mulf %224, %224 : vector<16x32xf32>
    %cst_71 = arith.constant dense<0.000000e+00> : vector<16xf32>
    %226 = vector.multi_reduction <add>, %225, %cst_71 [1] : vector<16x32xf32> to vector<16xf32>
    %227 = vector.shape_cast %226 : vector<16xf32> to vector<16x1xf32>
    %cst_72 = arith.constant 3.200000e+01 : f32
    %228 = vector.broadcast %cst_72 : f32 to vector<16x1xf32>
    %229 = arith.divf %227, %228 : vector<16x1xf32>
    %cst_73 = arith.constant 9.99999996E-13 : f32
    %230 = vector.broadcast %cst_73 : f32 to vector<16x1xf32>
    %231 = arith.addf %229, %230 : vector<16x1xf32>
    %232 = math.rsqrt %231 : vector<16x1xf32>
    %233 = vector.broadcast %232 : vector<16x1xf32> to vector<16x32xf32>
    %234 = arith.mulf %224, %233 : vector<16x32xf32>
    %235 = vector.broadcast %17 : vector<1x32xf32> to vector<16x32xf32>
    %236 = arith.mulf %234, %235 : vector<16x32xf32>
    %237 = vector.broadcast %18 : vector<1x32xf32> to vector<16x32xf32>
    %238 = arith.addf %236, %237 : vector<16x32xf32>
    %239 = arith.truncf %238 : vector<16x32xf32> to vector<16x32xbf16>
    %cst_74 = arith.constant dense<0.000000e+00> : vector<16x64xf32>
    %240 = tpu.matmul %239, %19, %cst_74 {dimension_numbers = #tpu.dot_dimension_numbers<[1], [0], [0], [1], [0, 0, 1, 1], [], []>} : vector<16x32xbf16>, vector<32x64xbf16>, vector<16x64xf32> -> vector<16x64xf32>
    %241 = vector.broadcast %20 : vector<1x64xf32> to vector<16x64xf32>
    %242 = arith.addf %240, %241 : vector<16x64xf32>
    %243 = arith.mulf %242, %242 : vector<16x64xf32>
    %244 = arith.mulf %242, %243 : vector<16x64xf32>
    %cst_75 = arith.constant 4.471500e-02 : f32
    %245 = vector.broadcast %cst_75 : f32 to vector<16x64xf32>
    %246 = arith.mulf %245, %244 : vector<16x64xf32>
    %247 = arith.addf %242, %246 : vector<16x64xf32>
    %cst_76 = arith.constant 0.797884583 : f32
    %248 = vector.broadcast %cst_76 : f32 to vector<16x64xf32>
    %249 = arith.mulf %248, %247 : vector<16x64xf32>
    %250 = math.tanh %249 : vector<16x64xf32>
    %cst_77 = arith.constant 1.000000e+00 : f32
    %251 = vector.broadcast %cst_77 : f32 to vector<16x64xf32>
    %252 = arith.addf %251, %250 : vector<16x64xf32>
    %cst_78 = arith.constant 5.000000e-01 : f32
    %253 = vector.broadcast %cst_78 : f32 to vector<16x64xf32>
    %254 = arith.mulf %253, %252 : vector<16x64xf32>
    %255 = arith.mulf %242, %254 : vector<16x64xf32>
    %256 = arith.truncf %255 : vector<16x64xf32> to vector<16x64xbf16>
    %cst_79 = arith.constant dense<0.000000e+00> : vector<16x32xf32>
    %257 = tpu.matmul %256, %21, %cst_79 {dimension_numbers = #tpu.dot_dimension_numbers<[1], [0], [0], [1], [0, 0, 1, 1], [], []>} : vector<16x64xbf16>, vector<64x32xbf16>, vector<16x32xf32> -> vector<16x32xf32>
    %258 = vector.broadcast %22 : vector<1x32xf32> to vector<16x32xf32>
    %259 = arith.addf %257, %258 : vector<16x32xf32>
    %260 = arith.addf %259, %238 : vector<16x32xf32>
    %cst_80 = arith.constant dense<0.000000e+00> : vector<16xf32>
    %261 = vector.multi_reduction <add>, %260, %cst_80 [1] : vector<16x32xf32> to vector<16xf32>
    %262 = vector.shape_cast %261 : vector<16xf32> to vector<16x1xf32>
    %cst_81 = arith.constant 3.200000e+01 : f32
    %263 = vector.broadcast %cst_81 : f32 to vector<16x1xf32>
    %264 = arith.divf %262, %263 : vector<16x1xf32>
    %265 = vector.broadcast %264 : vector<16x1xf32> to vector<16x32xf32>
    %266 = arith.subf %260, %265 : vector<16x32xf32>
    %267 = arith.mulf %266, %266 : vector<16x32xf32>
    %cst_82 = arith.constant dense<0.000000e+00> : vector<16xf32>
    %268 = vector.multi_reduction <add>, %267, %cst_82 [1] : vector<16x32xf32> to vector<16xf32>
    %269 = vector.shape_cast %268 : vector<16xf32> to vector<16x1xf32>
    %cst_83 = arith.constant 3.200000e+01 : f32
    %270 = vector.broadcast %cst_83 : f32 to vector<16x1xf32>
    %271 = arith.divf %269, %270 : vector<16x1xf32>
    %cst_84 = arith.constant 9.99999996E-13 : f32
    %272 = vector.broadcast %cst_84 : f32 to vector<16x1xf32>
    %273 = arith.addf %271, %272 : vector<16x1xf32>
    %274 = math.rsqrt %273 : vector<16x1xf32>
    %275 = vector.broadcast %274 : vector<16x1xf32> to vector<16x32xf32>
    %276 = arith.mulf %266, %275 : vector<16x32xf32>
    %277 = vector.broadcast %23 : vector<1x32xf32> to vector<16x32xf32>
    %278 = arith.mulf %276, %277 : vector<16x32xf32>
    %279 = vector.broadcast %24 : vector<1x32xf32> to vector<16x32xf32>
    %280 = arith.addf %278, %279 : vector<16x32xf32>
    %c0_85 = arith.constant 0 : index
    %c0_86 = arith.constant 0 : index
    %281 = vector.load %arg16[%c0_85, %c0_86] : memref<16x32xf32, #tpu.memory_space<vmem>>, vector<16x32xf32>
    tpu.vector_store %arg16[%c0_85, %c0_86], %280 {strides = array<i32>} : memref<16x32xf32, #tpu.memory_space<vmem>>, vector<16x32xf32>,
    return
  }
}

</mosaic_0001>

<bundles_post_ra>
// kernel: tpu_custom_call.1
= control target key start
LH: loop header
LB: loop body
LE: loop exit
PB: predicated region body
PF: predicated region fallthrough
CT: control target
= control target key end

     0   :  { %s2584_s0 = inlined_call_operand.hbm [shape: bf16[16,32], index: 0, kind: input, shape index: {}]   ;;  %s2585_s1 = inlined_call_operand.vmem [shape: f32[16,1], index: 1, kind: input, shape index: {}]   ;;  %s2586_s2 = inlined_call_operand.vmem [shape: bf16[32,32], index: 2, kind: input, shape index: {}]   ;;  %s2587_s3 = inlined_call_operand.hbm [shape: f32[1,32], index: 3, kind: input, shape index: {}]   ;;  %s2588_s4 = inlined_call_operand.vmem [shape: bf16[32,96], index: 4, kind: input, shape index: {}]   ;;  %s2589_s5 = inlined_call_operand.vmem [shape: f32[1,96], index: 5, kind: input, shape index: {}]   ;;  %s2590_s6 = inlined_call_operand.vmem [shape: bf16[32,32], index: 6, kind: input, shape index: {}]   ;;  %s2591_s7 = inlined_call_operand.vmem [shape: f32[1,32], index: 7, kind: input, shape index: {}]   ;;  %s2592_s8 = inlined_call_operand.vmem [shape: f32[1,32], index: 8, kind: input, shape index: {}]   ;;  %s2593_s9 = inlined_call_operand.vmem [shape: f32[1,32], index: 9, kind: input, shape index: {}]   ;;  %s2594_s10 = inlined_call_operand.vmem [shape: bf16[32,64], index: 10, kind: input, shape index: {}]   ;;  %s2595_s11 = inlined_call_operand.vmem [shape: f32[1,64], index: 11, kind: input, shape index: {}]   ;;  %s2596_s12 = inlined_call_operand.vmem [shape: bf16[64,32], index: 12, kind: input, shape index: {}]   ;;  %s2597_s13 = inlined_call_operand.vmem [shape: f32[1,32], index: 13, kind: input, shape index: {}]   ;;  %s2598_s14 = inlined_call_operand.vmem [shape: f32[1,32], index: 14, kind: input, shape index: {}]   ;;  %s2599_s15 = inlined_call_operand.vmem [shape: f32[1,32], index: 15, kind: input, shape index: {}]   ;;  %s2600_s16 = inlined_call_operand.hbm [shape: f32[16,32], index: 16, kind: output, shape index: {}]  }
   0x1   :  { %2603 = sst [smem:[#allocation11_spill]] %s2584_s0 }
   0x2   :  { %2604 = sst [smem:[#allocation12_spill]] %s2600_s16 }
   0x3   :  { %21 = vsyncpa [#allocation3], 0 }
   0x4   :  { %22 = vsyncpa [#allocation6], 0 }
   0x5   :  { %23 = vsyncpa [#allocation4], 0  ;;  %s2055_s21 = smov [#allocation2]   ;;  %s2605_s25 = sld [smem:[#allocation11_spill]] }
   0x6   :  { %s29_s22 = sshll.u32 %s2055_s21, 4  ;;  %s30_s22 = int_to_ptr.vmem [resolvable:$true] %s29_s22 }
   0xb   :  { %s1983_s26 = scalar_lea.hbm %s2605_s25, 128 }
   0xc   :  { %p1984_p0 = scmp.ne.s32.totalorder %s2605_s25, %s1983_s26  ;;  %p1987_p1 = scmp.lt.u32.totalorder %s1983_s26, %s2605_s25 }
   0xe   :  { %p1989_p2 = pnand %p1987_p1, %p1984_p0 }
  0x10   :  { %1992 = shalt.err (!%p1989_p2)
}
  0x11   :  { %s1993_s0 = scalar_lea.vmem %s30_s22, 128  ;;  %p1998_p4 = scmp.lt.s32.totalorder %s30_s22, %s30_s22 }
  0x12   :  { %p1994_p3 = scmp.ne.s32.totalorder %s30_s22, %s1993_s0  ;;  %p1999_p5 = scmp.lt.s32.totalorder %s1993_s0, %s1993_s0 }
  0x14   :  { %p2000_p6 = por %p1999_p5, %p1998_p4 }
  0x16   :  { %p2001_p7 = pnand %p2000_p6, %p1994_p3 }
  0x18   :  { %2004 = shalt.err (!%p2001_p7)
}
  0x19   :  { %s2056_s17 = smov 64   ;;  %s2057_s18 = smov 4  }
  0x1a   :  { %35 = dma.hbm_to_vmem [thread:$0]  %s2605_s25, 128, %s30_s22, [#allocation3], %s2056_s17, %s2056_s17, %s2057_s18  }
  0x1b   :  { %s2058_s21 = smov [#allocation5]   ;;  %s2005_s27 = scalar_lea.hbm %s2587_s3, 16 }
  0x1c   :  { %s46_s23 = sshll.u32 %s2058_s21, 4  ;;  %p2006_p8 = scmp.ne.s32.totalorder %s2587_s3, %s2005_s27  ;;  %s47_s23 = int_to_ptr.vmem [resolvable:$true] %s46_s23 }
  0x1d   :  { %p2009_p9 = scmp.lt.u32.totalorder %s2005_s27, %s2587_s3 }
  0x1f   :  { %p2011_p10 = pnand %p2009_p9, %p2006_p8 }
  0x21   :  { %2014 = shalt.err (!%p2011_p10)
}
  0x22   :  { %s2015_s16 = scalar_lea.vmem %s47_s23, 16  ;;  %s2019_s22 = scalar_lea.vmem %s47_s23, 32 }
  0x23   :  { %p2016_p11 = scmp.ne.s32.totalorder %s47_s23, %s2015_s16  ;;  %p2020_p12 = scmp.lt.s32.totalorder %s47_s23, %s47_s23 }
  0x24   :  { %p2021_p13 = scmp.lt.s32.totalorder %s2019_s22, %s2015_s16 }
  0x26   :  { %p2022_p0 = por %p2021_p13, %p2020_p12 }
  0x28   :  { %p2023_p1 = pnand %p2022_p0, %p2016_p11 }
  0x2a   :  { %2026 = shalt.err (!%p2023_p1)
}
  0x2b   :  { %49 = dma.hbm_to_vmem [thread:$0]  %s2587_s3, 16, %s47_s23, [#allocation6]  }
  0x2c   :  { %2049 = dma.done.wait [#allocation3], 128  }
  0x2d   :  { %2050 = vsyncadd [#allocation3], 4294967168 }
  0x2e   :  { %2051 = dma.done.wait [#allocation6], 16  }
  0x2f   :  { %2052 = vsyncadd [#allocation6], 4294967280  ;;  %v2059_v0 = vmov 0.0   ;;  %vm2060_vm0 = vmmov 0   ;;  %v1930_v1 = vld [vmem:[%s2586_s2] sm:$0xff]   ;;  %v1931_v2 = vld [vmem:[%s2586_s2 + $0x8] sm:$0xff]   ;;  %v86_v60 = vlaneseq }
  0x30   :  { %1734 = vmatprep.subr.bf16.mxu0 %v2059_v0  ;;  %1738 = vmatprep.mubr.msk.bf16.mxu0 %vm2060_vm0, %v2059_v0  ;;  %v1932_v3 = vld [vmem:[#allocation2] sm:$0xff]   ;;  %vm166_vm1 = vcmask 261120   ;;  %v2203_v5 = vld [vmem:[%s2588_s4 + $0x8] sm:$0xff]   ;;  %v2061_v7 = vmov 0   ;;  %vm332_vm4 = vcmask 1043456   ;;  %vm325_vm5 = vcmask 64512  }
  0x31   :  { %1742 = vmatprep.subr.bf16.mxu1 %v2059_v0  ;;  %1746 = vmatprep.mubr.msk.bf16.mxu1 %vm2060_vm0, %v2059_v0  ;;  %v2196_v4 = vld [vmem:[%s2588_s4] sm:$0xff]   ;;  %v85_v8 = vld [vmem:[%s2585_s1 + $0x8] sm:$0xff]  ;;  %v2063_v51 = vmov 32   ;;  %v87_v61 = vshrl.u32 %v86_v60, 7  ;;  %v92_v62 = vand.u32 127, %v86_v60  ;;  %s2064_s30 = smov 32  }
  0x32   :  { %1735 = vmatpush3.bf16.msra.mxu0 %v1930_v1  ;;  %1743 = vmatpush3.bf16.msra.mxu1 %v2196_v4  ;;  %v84_v6 = vld [vmem:[%s2585_s1] sm:$0xff]  ;;  %v1636_v9 = vld [vmem:[#allocation5] ss:$0 sm:$0xff]  ;;  %vm884_vm10 = vcmask 523264  }
  0x33   :  { %1736 = vmatprep.subr.bf16.mxu0 %v2059_v0  ;;  %1744 = vmatprep.subr.bf16.mxu1 %v2059_v0  ;;  %v2225_v17 = vld [vmem:[%s2589_s5] ss:$0 sm:$0xff]  ;;  %s2062_s5 = smov 96   ;;  %v88_v63 = vadd.s32 8, %v87_v61  ;;  %v89_v1 = vadd.s32 16, %v87_v61 }
  0x34   :  { %1887 = vset.pattern.permute.xlu0 %v2061_v7 }
  0x35   :  { %286 = vperm.xlu0 %1887, %v84_v6   ;;  %v90_v6 = vadd.s32 24, %v87_v61  ;;  %v94_v7 = vshra.s32 %v88_v63, 3 }
  0x36   :  { %1737 = vmatpush3.bf16.msra.mxu0 %v1931_v2  ;;  %1745 = vmatpush3.bf16.msra.mxu1 %v2203_v5  ;;  %v97_v2 = vshra.s32 %v92_v62, 3 }
  0x37   :  { %1756 = vmatprep.subr.bf16.mxu1 %v2059_v0 }
  0x38   :  { %vm99_vm7 = vcmp.eq.s32.totalorder %v94_v7, %v97_v2 }
  0x39   :  { %1739 = vmatmul.mubr.msk.bf16.vlgmr.msra.gmra.mrb[0].mxu0 %vm166_vm1, %v1932_v3  ;;  %291 = vperm.xlu0 %1887, %v85_v8   ;;  %v93_v3 = vshra.s32 %v87_v61, 3  ;;  %v95_v8 = vshra.s32 %v89_v1, 3 }
  0x3b   :  { %vm98_vm6 = vcmp.eq.s32.totalorder %v93_v3, %v97_v2  ;;  %vm100_vm8 = vcmp.eq.s32.totalorder %v95_v8, %v97_v2 }
  0xb4   :  { %v2230_v27 = vpop.permute.xlu0 %286 }
  0xb8   :  { %v2232_v33 = vpop.permute.xlu0 %291 }
 0x10c   :  { %v204_v10 = vpop.f32.mrb[0].mxu0 }
 0x10d   :  { %v1740_v11 = vpop.f32.mrb[1].mxu0  ;;  %v2213_v13 = vadd.f32 %v1636_v9, %v204_v10 }
 0x10e   :  { %v207_v12 = vpop.f32.mrb[2].mxu0  ;;  %v2271_v11 = vsel %vm98_vm6, 1.0, %v2059_v0 }
 0x10f   :  { %v2215_v14 = vadd.f32 %v1636_v9, %v207_v12  ;;  %v1741_v15 = vpop.f32.mrb[3].mxu0  ;;  %v96_v9 = vshra.s32 %v90_v6, 3  ;;  %v2274_v12 = vsel %vm99_vm7, 1.0, %v2059_v0 }
 0x111   :  { %v211_v16 = vpack.c.bf16 %v2215_v14, %v2213_v13  ;;  %vm101_vm9 = vcmp.eq.s32.totalorder %v96_v9, %v97_v2 }
 0x113   :  { %1747 = vmatmul.mubr.msk.bf16.vlgmr.msra.gmra.mrb[0].mxu1 %vm166_vm1, %v211_v16 }
 0x114   :  { %1760 = vmatprep.mubr.msk.bf16.mxu1 %vm2060_vm0, %v2059_v0 }
 0x1e6   :  { %v267_v18 = vpop.f32.mrb[0].mxu1 }
 0x1e7   :  { %v268_v19 = vadd.f32 %v2225_v17, %v267_v18  ;;  %v1748_v20 = vpop.f32.mrb[1].mxu1 }
 0x1e8   :  { %v270_v21 = vpop.f32.mrb[2].mxu1 }
 0x1e9   :  { %v278_v22 = vmul.f32 1.442695, %v268_v19  ;;  %v271_v23 = vadd.f32 %v2225_v17, %v270_v21  ;;  %v1749_v24 = vpop.f32.mrb[3].mxu1  ;;  %v276_v28 = vadd.f32 1.0, %v268_v19  ;;  %vm274_vm2 = vcmp.gt.f32.partialorder %v268_v19, 0.0 }
 0x1ea   :  { %v2279_v21 = vsel %vm100_vm8, 1.0, %v2059_v0 }
 0x1eb   :  { %1943 = vpow2.f32 %v278_v22  ;;  %v280_v25 = vmul.f32 1.442695, %v271_v23  ;;  %v297_v26 = vpack.c.bf16 %v271_v23, %v268_v19  ;;  %v277_v31 = vadd.f32 1.0, %v271_v23 }
 0x1ec   :  { %vm275_vm3 = vcmp.gt.f32.partialorder %v271_v23, 0.0  ;;  %v2282_v22 = vsel %vm101_vm9, 1.0, %v2059_v0 }
 0x1ed   :  { %1945 = vpow2.f32 %v280_v25  ;;  %300 = vrot.lane.b32.xlu0 %v297_v26, %s2056_s17 }
 0x1f5   :  { %v1944_v29 = vpop.eup %1943 }
 0x1f6   :  { %v282_v30 = vsel %vm274_vm2, %v276_v28, %v1944_v29 }
 0x1f7   :  { %v1946_v32 = vpop.eup %1945  ;;  %v294_v35 = vmul.f32 %v2230_v27, %v282_v30 }
 0x1f8   :  { %v283_v34 = vsel %vm275_vm3, %v277_v31, %v1946_v32 }
 0x1f9   :  { %v295_v36 = vmul.f32 %v2232_v33, %v283_v34  ;;  %v2236_v37 = vpack.c.bf16 %v283_v34, %v282_v30 }
 0x1fb   :  { %v296_v38 = vpack.c.bf16 %v295_v36, %v294_v35 }
 0x1fd   :  { %306 = vrot.lane.b32.xlu1 %v296_v38, %s2062_s5  ;;  %v483_v39 = vrot.slane %v296_v38, 4 }
 0x201   :  { %484 = vrot.lane.b32.xlu1 %v483_v39, %s2062_s5 }
 0x25f   :  { %v301_v40 = vpop.permute.xlu0 %300 }
 0x260   :  { %v304_v41 = vsel %vm166_vm1, %v301_v40, 1065369472 }
 0x261   :  { %v333_v42 = vsel %vm332_vm4, %v304_v41, 0  ;;  %v504_v43 = vrot.slane %v304_v41, 4  ;;  %1870 = vmatprep.subr.msk.bf16.mxu0 %vm332_vm4, %v304_v41 }
 0x262   :  { %1751 = vmatpush3.bf16.msra.mxu0 %v333_v42 }
 0x263   :  { %1871 = vmatprep.subr.msk.bf16.mxu0 %vm332_vm4, %v504_v43  ;;  %v512_v49 = vsel %vm332_vm4, %v504_v43, 0 }
 0x26f   :  { %v307_v44 = vpop.permute.xlu1 %306 }
 0x270   :  { %309 = vxpose.xlu1.c.b16.start.end [1/1] (short) (narrow) %v307_v44, 32 }
 0x273   :  { %v485_v45 = vpop.permute.xlu1 %484 }
 0x274   :  { %487 = vxpose.xlu0.c.b16.start.end [1/1] (short) (narrow) %v485_v45, 32  ;;  %1889 = vset.pattern.permute.xlu1 %v2063_v51 }
 0x27d   :  { %1888 = vset.pattern.permute.xlu0 %v2063_v51 }
 0x2d6   :  { %v317_v46 = vpop.trf.xlu1 }
 0x2d7   :  { %1752 = vmatprep.mubr.msk.bf16.mxu0 %vm325_vm5, %v317_v46 }
 0x2da   :  { %v318_v47 = vpop.trf.xlu1  ;;  %v495_v48 = vpop.trf.xlu0 }
 0x2db   :  { %1753 = vmatmul.mubr.msk.bf16.vlgmr.msra.gmra.mrb[4].mxu0 %vm325_vm5, %v318_v47 }
 0x2dc   :  { %1765 = vmatpush3.bf16.msra.mxu0 %v512_v49  ;;  %1766 = vmatprep.mubr.msk.bf16.mxu0 %vm325_vm5, %v495_v48 }
 0x2dd   :  { %1778 = vmatprep.subr.bf16.mxu0 %v2059_v0 }
 0x2de   :  { %v496_v50 = vpop.trf.xlu0 }
 0x2e3   :  { %1767 = vmatmul.mubr.msk.bf16.vlgmr.msra.gmra.mrb[8].mxu0 %vm325_vm5, %v496_v50 }
 0x2e4   :  { %1782 = vmatprep.mubr.msk.bf16.mxu0 %vm2060_vm0, %v2059_v0 }
 0x3ae   :  { %v2252_v52 = vpop.f32.mrb[4].mxu0 }
 0x3af   :  { %v369_v53 = vpop.f32.mrb[5].mxu0  ;;  %v386_v49 = vmul.f32 %v2252_v52, %v2279_v21 }
 0x3b0   :  { %390 = vperm.xlu0 %1888, %v369_v53   ;;  %v2254_v54 = vpop.f32.mrb[6].mxu0  ;;  %v384_v41 = vmul.f32 %v2271_v11, %v369_v53 }
 0x3b1   :  { %v372_v55 = vpop.f32.mrb[7].mxu0  ;;  %v387_v50 = vmul.f32 %v2254_v54, %v2282_v22 }
 0x3b2   :  { %395 = vperm.xlu1 %1889, %v372_v55   ;;  %v385_v42 = vmul.f32 %v2274_v12, %v372_v55 }
 0x3b4   :  { %405 = vperm.xlu0 %1888, %v2254_v54  }
 0x3b6   :  { %400 = vperm.xlu1 %1889, %v2252_v52   ;;  %v2258_v56 = vpop.f32.mrb[8].mxu0 }
 0x3b7   :  { %v2260_v57 = vpop.f32.mrb[9].mxu0  ;;  %v565_v8 = vmul.f32 %v2258_v56, %v2279_v21 }
 0x3b8   :  { %v2262_v58 = vpop.f32.mrb[10].mxu0  ;;  %v563_v63 = vmul.f32 %v2271_v11, %v2260_v57 }
 0x3b9   :  { %v2264_v59 = vpop.f32.mrb[11].mxu0 }
 0x3ba   :  { %569 = vperm.xlu1 %1889, %v2260_v57   ;;  %574 = vperm.xlu0 %1888, %v2264_v59   ;;  %v564_v52 = vmul.f32 %v2274_v12, %v2264_v59  ;;  %v566_v57 = vmul.f32 %v2262_v58, %v2282_v22 }
 0x3be   :  { %579 = vperm.xlu1 %1889, %v2258_v56   ;;  %584 = vperm.xlu0 %1888, %v2262_v58   ;;  %v614_v56 = vrot.slane %v2236_v37, 4  ;;  %v2331_v58 = vld [vmem:[%s2590_s6] sm:$0xff]  }
 0x3bf   :  { %1779 = vmatpush3.bf16.msra.mxu0 %v2331_v58 }
 0x3c0   :  { %1780 = vmatprep.subr.bf16.mxu0 %v2059_v0 }
 0x42f   :  { %v391_v10 = vpop.permute.xlu0 %390 }
 0x430   :  { %v408_v16 = vmul.f32 %v2271_v11, %v391_v10 }
 0x431   :  { %v396_v15 = vpop.permute.xlu1 %395 }
 0x432   :  { %v409_v18 = vmul.f32 %v2274_v12, %v396_v15 }
 0x433   :  { %v406_v19 = vpop.permute.xlu0 %405 }
 0x434   :  { %v1890_v20 = vpack.i.bf16 %v409_v18, %v408_v16  ;;  %v411_v24 = vmul.f32 %v2282_v22, %v406_v19 }
 0x435   :  { %v401_v23 = vpop.permute.xlu1 %400 }
 0x436   :  { %v410_v25 = vmul.f32 %v2279_v21, %v401_v23  ;;  %1891 = vrot.lane.b32.xlu1 %v1890_v20, %s2064_s30  ;;  %v2338_v23 = vld [vmem:[%s2590_s6 + $0x8] sm:$0xff]  }
 0x437   :  { %1781 = vmatpush3.bf16.msra.mxu0 %v2338_v23 }
 0x438   :  { %v1895_v26 = vpack.i.bf16 %v411_v24, %v410_v25  ;;  %1794 = vmatprep.subr.bf16.mxu0 %v2059_v0 }
 0x439   :  { %v570_v28 = vpop.permute.xlu1 %569  ;;  %v575_v29 = vpop.permute.xlu0 %574 }
 0x43a   :  { %v587_v30 = vmul.f32 %v2271_v11, %v570_v28  ;;  %v588_v31 = vmul.f32 %v2274_v12, %v575_v29  ;;  %1896 = vrot.lane.b32.xlu0 %v1895_v26, %s2064_s30 }
 0x43c   :  { %v1900_v32 = vpack.i.bf16 %v588_v31, %v587_v30 }
 0x43d   :  { %v580_v34 = vpop.permute.xlu1 %579  ;;  %v585_v35 = vpop.permute.xlu0 %584 }
 0x43e   :  { %v589_v36 = vmul.f32 %v2279_v21, %v580_v34  ;;  %v590_v38 = vmul.f32 %v2282_v22, %v585_v35  ;;  %1901 = vrot.lane.b32.xlu1 %v1900_v32, %s2064_s30 }
 0x440   :  { %v1905_v39 = vpack.i.bf16 %v590_v38, %v589_v36  ;;  %v2350_v38 = vld [vmem:[%s2591_s7] ss:$0 sm:$0xff] }
 0x442   :  { %1906 = vrot.lane.b32.xlu0 %v1905_v39, %s2064_s30 }
 0x4a8   :  { %v1892_v40 = vpop.permute.xlu1 %1891 }
 0x4a9   :  { %v1894_v43 = vunpack.i.h.bf16 %v1892_v40  ;;  %v1893_v44 = vunpack.i.l.bf16 %v1892_v40 }
 0x4ab   :  { %v428_v45 = vsel %vm166_vm1, %v384_v41, %v1893_v44  ;;  %v429_v46 = vsel %vm166_vm1, %v385_v42, %v1894_v43 }
 0x4ac   :  { %v432_v47 = vpack.c.bf16 %v429_v46, %v428_v45  ;;  %v1897_v48 = vpop.permute.xlu0 %1896 }
 0x4ad   :  { %v1899_v51 = vunpack.i.h.bf16 %v1897_v48  ;;  %v1898_v60 = vunpack.i.l.bf16 %v1897_v48 }
 0x4ae   :  { %1757 = vmatpush3.bf16.msra.mxu1 %v432_v47 }
 0x4af   :  { %v431_v53 = vsel %vm166_vm1, %v387_v50, %v1899_v51  ;;  %v430_v55 = vsel %vm166_vm1, %v386_v49, %v1898_v60  ;;  %1758 = vmatprep.subr.bf16.mxu1 %v2059_v0 }
 0x4b0   :  { %v433_v61 = vpack.c.bf16 %v431_v53, %v430_v55  ;;  %v1902_v62 = vpop.permute.xlu1 %1901 }
 0x4b1   :  { %v1904_v1 = vunpack.i.h.bf16 %v1902_v62  ;;  %v1903_v2 = vunpack.i.l.bf16 %v1902_v62 }
 0x4b2   :  { %1759 = vmatpush3.bf16.msra.mxu1 %v433_v61 }
 0x4b3   :  { %v607_v54 = vsel %vm166_vm1, %v563_v63, %v1903_v2  ;;  %v608_v3 = vsel %vm166_vm1, %v564_v52, %v1904_v1  ;;  %1770 = vmatprep.subr.bf16.mxu1 %v2059_v0  ;;  %v2369_v52 = vld [vmem:[%s2594_s10 + $0x8] sm:$0xff]  }
 0x4b4   :  { %v611_v6 = vpack.c.bf16 %v608_v3, %v607_v54  ;;  %v1907_v7 = vpop.permute.xlu0 %1906 }
 0x4b5   :  { %v1909_v9 = vunpack.i.h.bf16 %v1907_v7  ;;  %v1908_v10 = vunpack.i.l.bf16 %v1907_v7  ;;  %1761 = vmatmul.mubr.msk.bf16.vlgmr.msra.gmra.mrb[4].mxu1 %vm166_vm1, %v2236_v37 }
 0x4b6   :  { %1771 = vmatpush3.bf16.msra.mxu1 %v611_v6  ;;  %1774 = vmatprep.mubr.msk.bf16.mxu1 %vm2060_vm0, %v2059_v0 }
 0x4b7   :  { %v610_v59 = vsel %vm166_vm1, %v566_v57, %v1909_v9  ;;  %v609_v15 = vsel %vm166_vm1, %v565_v8, %v1908_v10  ;;  %1772 = vmatprep.subr.bf16.mxu1 %v2059_v0  ;;  %v2377_v57 = vld [vmem:[%s2592_s8] ss:$0 sm:$0xff] }
 0x4b8   :  { %v612_v16 = vpack.c.bf16 %v610_v59, %v609_v15 }
 0x4ba   :  { %1773 = vmatpush3.bf16.msra.mxu1 %v612_v16  ;;  %v2383_v16 = vld [vmem:[%s2593_s9] ss:$0 sm:$0xff] }
 0x4bb   :  { %1786 = vmatprep.subr.bf16.mxu1 %v2059_v0 }
 0x4bd   :  { %1775 = vmatmul.mubr.msk.bf16.vlgmr.msra.gmra.mrb[8].mxu1 %vm166_vm1, %v614_v56 }
 0x4be   :  { %1790 = vmatprep.mubr.msk.bf16.mxu1 %vm2060_vm0, %v2059_v0 }
 0x588   :  { %v471_v18 = vpop.f32.mrb[4].mxu1 }
 0x589   :  { %1947 = vrcp.f32 %v471_v18  ;;  %v1762_v19 = vpop.f32.mrb[5].mxu1 }
 0x58a   :  { %v474_v20 = vpop.f32.mrb[6].mxu1 }
 0x58b   :  { %v1763_v37 = vpop.f32.mrb[7].mxu1 }
 0x58c   :  { %v2397_v37 = vld [vmem:[%s2596_s12] sm:$0xff]  }
 0x590   :  { %v652_v24 = vpop.f32.mrb[8].mxu1 }
 0x591   :  { %1949 = vrcp.f32 %v652_v24  ;;  %v1776_v25 = vpop.f32.mrb[9].mxu1 }
 0x592   :  { %v655_v26 = vpop.f32.mrb[10].mxu1  ;;  %v2425_v25 = vld [vmem:[%s2595_s11] ss:$0 sm:$0xff] }
 0x593   :  { %v1948_v28 = vpop.eup %1947  ;;  %v1777_v29 = vpop.f32.mrb[11].mxu1 }
 0x594   :  { %479 = vrot.lane.b32.xlu1 %v1948_v28, %s2062_s5 }
 0x59b   :  { %v1950_v30 = vpop.eup %1949 }
 0x59c   :  { %660 = vrot.lane.b32.xlu0 %v1950_v30, %s2062_s5 }
 0x606   :  { %v480_v31 = vpop.permute.xlu1 %479 }
 0x607   :  { %v482_v34 = vmul.f32 %v480_v31, %v471_v18 }
 0x60e   :  { %v661_v32 = vpop.permute.xlu0 %660 }
 0x60f   :  { %v663_v35 = vmul.f32 %v661_v32, %v652_v24  ;;  %v2418_v24 = vld [vmem:[%s2596_s12 + $0x18] sm:$0xff]  }
 0x611   :  { %v664_v36 = vpack.c.bf16 %v663_v35, %v482_v34 }
 0x613   :  { %1783 = vmatmul.mubr.msk.bf16.vlgmr.msra.gmra.mrb[12].mxu0 %vm166_vm1, %v664_v36 }
 0x614   :  { %1802 = vmatprep.mubr.msk.bf16.mxu0 %vm2060_vm0, %v2059_v0  ;;  %1795 = vmatpush3.bf16.msra.mxu0 %v2397_v37 }
 0x615   :  { %1796 = vmatprep.subr.bf16.mxu0 %v2059_v0 }
 0x6e6   :  { %v720_v39 = vpop.f32.mrb[12].mxu0 }
 0x6e7   :  { %v721_v40 = vadd.f32 %v2350_v38, %v720_v39  ;;  %v1784_v41 = vpop.f32.mrb[13].mxu0 }
 0x6e8   :  { %v723_v42 = vpop.f32.mrb[14].mxu0 }
 0x6e9   :  { %v724_v43 = vadd.f32 %v2350_v38, %v723_v42  ;;  %v1785_v44 = vpop.f32.mrb[15].mxu0  ;;  %v727_v45 = vadd.f32 %v721_v40, %v2213_v13 }
 0x6eb   :  { %v729_v46 = vsel %vm166_vm1, %v727_v45, 0.0  ;;  %v728_v47 = vadd.f32 %v724_v43, %v2215_v14  ;;  %v2363_v14 = vld [vmem:[%s2594_s10] sm:$0xff]  }
 0x6ec   :  { %730 = vadd.xlane.f32.xlu1 %v729_v46  ;;  %1787 = vmatpush3.bf16.msra.mxu1 %v2363_v14 }
 0x6ed   :  { %v732_v48 = vsel %vm166_vm1, %v728_v47, 0.0  ;;  %1788 = vmatprep.subr.bf16.mxu1 %v2059_v0 }
 0x6ee   :  { %733 = vadd.xlane.f32.xlu0 %v732_v48 }
 0x6f0   :  { %1789 = vmatpush3.bf16.msra.mxu1 %v2369_v52 }
 0x6f1   :  { %1806 = vmatprep.subr.bf16.mxu1 %v2059_v0 }
 0x779   :  { %v731_v49 = vpop.xlane.xlu1 %730 }
 0x77a   :  { %v736_v50 = vmul.f32 0.03125, %v731_v49 }
 0x77b   :  { %v734_v51 = vpop.xlane.xlu0 %733 }
 0x77c   :  { %v738_v60 = vsub.f32 %v727_v45, %v736_v50  ;;  %v737_v53 = vmul.f32 0.03125, %v734_v51 }
 0x77e   :  { %v739_v55 = vsub.f32 %v728_v47, %v737_v53  ;;  %v740_v61 = vmul.f32 %v738_v60, %v738_v60 }
 0x780   :  { %v742_v62 = vsel %vm166_vm1, %v740_v61, 0.0  ;;  %v741_v63 = vmul.f32 %v739_v55, %v739_v55  ;;  %v2435_v61 = vld [vmem:[%s2597_s13] ss:$0 sm:$0xff] }
 0x781   :  { %743 = vadd.xlane.f32.xlu0 %v742_v62 }
 0x782   :  { %v745_v13 = vsel %vm166_vm1, %v741_v63, 0.0 }
 0x783   :  { %746 = vadd.xlane.f32.xlu1 %v745_v13 }
 0x80e   :  { %v744_v1 = vpop.xlane.xlu0 %743 }
 0x80f   :  { %v748_v2 = vmul.f32 0.03125, %v744_v1 }
 0x810   :  { %v747_v54 = vpop.xlane.xlu1 %746 }
 0x811   :  { %v750_v3 = vadd.f32 1e-12, %v748_v2  ;;  %v749_v6 = vmul.f32 0.03125, %v747_v54 }
 0x813   :  { %1951 = vrsqrt.f32 %v750_v3  ;;  %v751_v7 = vadd.f32 1e-12, %v749_v6 }
 0x815   :  { %1953 = vrsqrt.f32 %v751_v7 }
 0x81d   :  { %v1952_v8 = vpop.eup %1951 }
 0x81e   :  { %v754_v9 = vmul.f32 %v1952_v8, %v738_v60 }
 0x81f   :  { %v1954_v10 = vpop.eup %1953 }
 0x820   :  { %v762_v59 = vmul.f32 %v2377_v57, %v754_v9  ;;  %v755_v15 = vmul.f32 %v1954_v10, %v739_v55 }
 0x822   :  { %v763_v56 = vmul.f32 %v2377_v57, %v755_v15  ;;  %v770_v18 = vadd.f32 %v2383_v16, %v762_v59 }
 0x824   :  { %v771_v19 = vadd.f32 %v2383_v16, %v763_v56 }
 0x826   :  { %v772_v20 = vpack.c.bf16 %v771_v19, %v770_v18 }
 0x828   :  { %1791 = vmatmul.mubr.msk.bf16.vlgmr.msra.gmra.mrb[12].mxu1 %vm166_vm1, %v772_v20 }
 0x829   :  { %1807 = vmatpush3.bf16.msra.mxu1 %v2196_v4  ;;  %1810 = vmatprep.mubr.msk.bf16.mxu1 %vm2060_vm0, %v2059_v0  ;;  %v2404_v4 = vld [vmem:[%s2596_s12 + $0x8] sm:$0xff]  }
 0x82a   :  { %1808 = vmatprep.subr.bf16.mxu1 %v2059_v0  ;;  %1797 = vmatpush3.bf16.msra.mxu0 %v2404_v4 }
 0x82b   :  { %1798 = vmatprep.subr.bf16.mxu0 %v2059_v0 }
 0x82d   :  { %1809 = vmatpush3.bf16.msra.mxu1 %v2203_v5  ;;  %v2411_v5 = vld [vmem:[%s2596_s12 + $0x10] sm:$0xff]  }
 0x82e   :  { %1799 = vmatpush3.bf16.msra.mxu0 %v2411_v5 }
 0x82f   :  { %1800 = vmatprep.subr.bf16.mxu0 %v2059_v0 }
 0x832   :  { %1801 = vmatpush3.bf16.msra.mxu0 %v2418_v24 }
 0x833   :  { %1820 = vmatprep.subr.bf16.mxu0 %v2059_v0 }
 0x8fb   :  { %v828_v26 = vpop.f32.mrb[12].mxu1 }
 0x8fc   :  { %v829_v28 = vadd.f32 %v2425_v25, %v828_v26  ;;  %v1792_v29 = vpop.f32.mrb[13].mxu1 }
 0x8fd   :  { %v831_v30 = vpop.f32.mrb[14].mxu1 }
 0x8fe   :  { %v835_v31 = vmul.f32 %v829_v28, %v829_v28  ;;  %v832_v32 = vadd.f32 %v2425_v25, %v831_v30  ;;  %v1793_v34 = vpop.f32.mrb[15].mxu1 }
 0x900   :  { %v837_v35 = vmul.f32 %v835_v31, %v829_v28  ;;  %v836_v36 = vmul.f32 %v832_v32, %v832_v32 }
 0x902   :  { %v839_v39 = vmul.f32 0.044715, %v837_v35  ;;  %v838_v40 = vmul.f32 %v836_v36, %v832_v32 }
 0x904   :  { %v841_v41 = vadd.f32 %v839_v39, %v829_v28  ;;  %v840_v42 = vmul.f32 0.044715, %v838_v40  ;;  %v2446_v39 = vld [vmem:[%s2598_s14] ss:$0 sm:$0xff]  ;;  %s2065_s14 = smov [#allocation7]  }
 0x906   :  { %v843_v43 = vmul.f32 0.7978846, %v841_v41  ;;  %v842_v44 = vadd.f32 %v840_v42, %v832_v32 }
 0x908   :  { %1955 = vtanh.f32 %v843_v43  ;;  %v844_v45 = vmul.f32 0.7978846, %v842_v44  ;;  %v2452_v44 = vld [vmem:[%s2599_s15] ss:$0 sm:$0xff]  ;;  %s1619_s15 = sshll.u32 %s2065_s14, 4  ;;  %s1620_s15 = int_to_ptr.vmem [resolvable:$true] %s1619_s15 }
 0x909   :  { %p2032_p3 = scmp.lt.s32.totalorder %s1620_s15, %s1620_s15 }
 0x90a   :  { %1957 = vtanh.f32 %v844_v45 }
 0x912   :  { %v1956_v46 = vpop.eup %1955 }
 0x913   :  { %v847_v47 = vadd.f32 1.0, %v1956_v46 }
 0x914   :  { %v1958_v48 = vpop.eup %1957 }
 0x915   :  { %v849_v49 = vmul.f32 0.5, %v847_v47  ;;  %v848_v50 = vadd.f32 1.0, %v1958_v48 }
 0x917   :  { %v850_v51 = vmul.f32 0.5, %v848_v50  ;;  %v851_v60 = vmul.f32 %v849_v49, %v829_v28 }
 0x919   :  { %v852_v53 = vmul.f32 %v850_v51, %v832_v32 }
 0x91b   :  { %v853_v55 = vpack.c.bf16 %v852_v53, %v851_v60 }
 0x91d   :  { %1803 = vmatmul.mubr.msk.bf16.vlgmr.msra.gmra.mrb[16].mxu0 %vm884_vm10, %v853_v55 }
 0x91e   :  { %1824 = vmatprep.mubr.msk.bf16.mxu0 %vm2060_vm0, %v2059_v0 }
 0x9f0   :  { %v922_v62 = vpop.f32.mrb[16].mxu0 }
 0x9f1   :  { %v923_v63 = vadd.f32 %v2435_v61, %v922_v62  ;;  %v1804_v13 = vpop.f32.mrb[17].mxu0 }
 0x9f2   :  { %v925_v1 = vpop.f32.mrb[18].mxu0 }
 0x9f3   :  { %v926_v2 = vadd.f32 %v2435_v61, %v925_v1  ;;  %v1805_v54 = vpop.f32.mrb[19].mxu0  ;;  %v929_v3 = vadd.f32 %v923_v63, %v770_v18 }
 0x9f5   :  { %v931_v6 = vsel %vm166_vm1, %v929_v3, 0.0  ;;  %v930_v7 = vadd.f32 %v926_v2, %v771_v19 }
 0x9f6   :  { %932 = vadd.xlane.f32.xlu0 %v931_v6 }
 0x9f7   :  { %v934_v8 = vsel %vm166_vm1, %v930_v7, 0.0 }
 0x9f8   :  { %935 = vadd.xlane.f32.xlu1 %v934_v8 }
 0xa83   :  { %v933_v9 = vpop.xlane.xlu0 %932 }
 0xa84   :  { %v937_v10 = vmul.f32 0.03125, %v933_v9 }
 0xa85   :  { %v936_v59 = vpop.xlane.xlu1 %935 }
 0xa86   :  { %v939_v15 = vsub.f32 %v929_v3, %v937_v10  ;;  %v938_v56 = vmul.f32 0.03125, %v936_v59 }
 0xa88   :  { %v940_v20 = vsub.f32 %v930_v7, %v938_v56  ;;  %v941_v26 = vmul.f32 %v939_v15, %v939_v15 }
 0xa8a   :  { %v943_v28 = vsel %vm166_vm1, %v941_v26, 0.0  ;;  %v942_v29 = vmul.f32 %v940_v20, %v940_v20 }
 0xa8b   :  { %944 = vadd.xlane.f32.xlu0 %v943_v28 }
 0xa8c   :  { %v946_v18 = vsel %vm166_vm1, %v942_v29, 0.0 }
 0xa8d   :  { %947 = vadd.xlane.f32.xlu1 %v946_v18 }
 0xb18   :  { %v945_v30 = vpop.xlane.xlu0 %944 }
 0xb19   :  { %v949_v19 = vmul.f32 0.03125, %v945_v30 }
 0xb1a   :  { %v948_v31 = vpop.xlane.xlu1 %947 }
 0xb1b   :  { %v951_v32 = vadd.f32 1e-12, %v949_v19  ;;  %v950_v34 = vmul.f32 0.03125, %v948_v31 }
 0xb1d   :  { %1959 = vrsqrt.f32 %v951_v32  ;;  %v952_v35 = vadd.f32 1e-12, %v950_v34 }
 0xb1f   :  { %1961 = vrsqrt.f32 %v952_v35 }
 0xb27   :  { %v1960_v36 = vpop.eup %1959 }
 0xb28   :  { %v955_v40 = vmul.f32 %v1960_v36, %v939_v15 }
 0xb29   :  { %v1962_v41 = vpop.eup %1961 }
 0xb2a   :  { %v963_v42 = vmul.f32 %v2446_v39, %v955_v40  ;;  %v956_v43 = vmul.f32 %v1962_v41, %v940_v20 }
 0xb2c   :  { %v964_v45 = vmul.f32 %v2446_v39, %v956_v43  ;;  %v2456_v46 = vadd.f32 %v2452_v44, %v963_v42 }
 0xb2e   :  { %v2459_v47 = vadd.f32 %v2452_v44, %v964_v45 }
 0xb30   :  { %v973_v48 = vpack.c.bf16 %v2459_v47, %v2456_v46 }
 0xb32   :  { %1811 = vmatmul.mubr.msk.bf16.vlgmr.msra.gmra.mrb[16].mxu1 %vm166_vm1, %v973_v48 }
 0xc05   :  { %v1011_v49 = vpop.f32.mrb[16].mxu1 }
 0xc06   :  { %v1012_v50 = vadd.f32 %v2225_v17, %v1011_v49  ;;  %v1812_v51 = vpop.f32.mrb[17].mxu1 }
 0xc07   :  { %v1014_v60 = vpop.f32.mrb[18].mxu1 }
 0xc08   :  { %v1022_v53 = vmul.f32 1.442695, %v1012_v50  ;;  %v1015_v55 = vadd.f32 %v2225_v17, %v1014_v60  ;;  %v1813_v62 = vpop.f32.mrb[19].mxu1  ;;  %v1020_v1 = vadd.f32 1.0, %v1012_v50  ;;  %vm1018_vm11 = vcmp.gt.f32.partialorder %v1012_v50, 0.0 }
 0xc0a   :  { %1963 = vpow2.f32 %v1022_v53  ;;  %v1024_v63 = vmul.f32 1.442695, %v1015_v55  ;;  %v1031_v13 = vpack.c.bf16 %v1015_v55, %v1012_v50  ;;  %v1021_v54 = vadd.f32 1.0, %v1015_v55 }
 0xc0b   :  { %vm1019_vm12 = vcmp.gt.f32.partialorder %v1015_v55, 0.0 }
 0xc0c   :  { %1965 = vpow2.f32 %v1024_v63 }
 0xc14   :  { %v1964_v2 = vpop.eup %1963 }
 0xc15   :  { %v1026_v3 = vsel %vm1018_vm11, %v1020_v1, %v1964_v2 }
 0xc16   :  { %v1966_v6 = vpop.eup %1965  ;;  %v1028_v8 = vmul.f32 %v1026_v3, %v2230_v27 }
 0xc17   :  { %v1027_v7 = vsel %vm1019_vm12, %v1021_v54, %v1966_v6 }
 0xc18   :  { %v1029_v9 = vmul.f32 %v1027_v7, %v2232_v33  ;;  %v2468_v10 = vpack.c.bf16 %v1027_v7, %v1026_v3 }
 0xc1a   :  { %v1030_v17 = vpack.c.bf16 %v1029_v9, %v1028_v8 }
 0xc1c   :  { %1039 = vrot.lane.b32.xlu0 %v1030_v17, %s2062_s5  ;;  %v1214_v59 = vrot.slane %v1030_v17, 4 }
 0xc1e   :  { %1215 = vrot.lane.b32.xlu1 %v1214_v59, %s2062_s5 }
 0xc22   :  { %1034 = vrot.lane.b32.xlu1 %v1031_v13, %s2056_s17  ;;  %s2027_s17 = scalar_lea.vmem %s1620_s15, 256 }
 0xc23   :  { %p2028_p2 = scmp.ne.s32.totalorder %s1620_s15, %s2027_s17  ;;  %p2033_p4 = scmp.lt.s32.totalorder %s2027_s17, %s2027_s17 }
 0xc25   :  { %p2034_p5 = por %p2033_p4, %p2032_p3 }
 0xc27   :  { %p2035_p6 = pnand %p2034_p5, %p2028_p2 }
 0xc8e   :  { %v1040_v15 = vpop.permute.xlu0 %1039 }
 0xc8f   :  { %1042 = vxpose.xlu0.c.b16.start.end [1/1] (short) (narrow) %v1040_v15, 32 }
 0xc90   :  { %v1216_v56 = vpop.permute.xlu1 %1215 }
 0xc91   :  { %1218 = vxpose.xlu1.c.b16.start.end [1/1] (short) (narrow) %v1216_v56, 32 }
 0xc94   :  { %v1035_v20 = vpop.permute.xlu1 %1034 }
 0xc95   :  { %v1037_v26 = vsel %vm166_vm1, %v1035_v20, 1065369472 }
 0xc96   :  { %v1064_v27 = vsel %vm332_vm4, %v1037_v26, 0  ;;  %v1235_v33 = vrot.slane %v1037_v26, 4  ;;  %1872 = vmatprep.subr.msk.bf16.mxu1 %vm332_vm4, %v1037_v26 }
 0xc97   :  { %1815 = vmatpush3.bf16.msra.mxu1 %v1064_v27 }
 0xc98   :  { %1873 = vmatprep.subr.msk.bf16.mxu1 %vm332_vm4, %v1235_v33  ;;  %v1243_v30 = vsel %vm332_vm4, %v1235_v33, 0 }
 0xcf5   :  { %v1050_v28 = vpop.trf.xlu0 }
 0xcf6   :  { %1816 = vmatprep.mubr.msk.bf16.mxu1 %vm325_vm5, %v1050_v28 }
 0xcf7   :  { %v1226_v29 = vpop.trf.xlu1 }
 0xcf9   :  { %v1051_v18 = vpop.trf.xlu0 }
 0xcfa   :  { %1817 = vmatmul.mubr.msk.bf16.vlgmr.msra.gmra.mrb[20].mxu1 %vm325_vm5, %v1051_v18 }
 0xcfb   :  { %1829 = vmatpush3.bf16.msra.mxu1 %v1243_v30  ;;  %1830 = vmatprep.mubr.msk.bf16.mxu1 %vm325_vm5, %v1226_v29  ;;  %v1227_v19 = vpop.trf.xlu1 }
 0xcfc   :  { %1842 = vmatprep.subr.bf16.mxu1 %v2059_v0 }
 0xd02   :  { %1831 = vmatmul.mubr.msk.bf16.vlgmr.msra.gmra.mrb[24].mxu1 %vm325_vm5, %v1227_v19 }
 0xd03   :  { %1843 = vmatpush3.bf16.msra.mxu1 %v2331_v58  ;;  %1846 = vmatprep.mubr.msk.bf16.mxu1 %vm2060_vm0, %v2059_v0 }
 0xd04   :  { %1844 = vmatprep.subr.bf16.mxu1 %v2059_v0 }
 0xd07   :  { %1845 = vmatpush3.bf16.msra.mxu1 %v2338_v23 }
 0xd08   :  { %1858 = vmatprep.subr.bf16.mxu1 %v2059_v0 }
 0xdcd   :  { %v1818_v31 = vpop.f32.mrb[20].mxu1 }
 0xdce   :  { %v1100_v32 = vpop.f32.mrb[21].mxu1  ;;  %v1117_v33 = vmul.f32 %v1818_v31, %v2279_v21 }
 0xdcf   :  { %1121 = vperm.xlu0 %1888, %v1100_v32   ;;  %v1819_v34 = vpop.f32.mrb[22].mxu1  ;;  %v1115_v9 = vmul.f32 %v2271_v11, %v1100_v32 }
 0xdd0   :  { %v1103_v35 = vpop.f32.mrb[23].mxu1  ;;  %v1118_v28 = vmul.f32 %v1819_v34, %v2282_v22 }
 0xdd1   :  { %1126 = vperm.xlu1 %1889, %v1103_v35   ;;  %v1116_v17 = vmul.f32 %v2274_v12, %v1103_v35 }
 0xdd3   :  { %1131 = vperm.xlu0 %1888, %v1818_v31  }
 0xdd5   :  { %1136 = vperm.xlu1 %1889, %v1819_v34   ;;  %v1832_v36 = vpop.f32.mrb[24].mxu1 }
 0xdd6   :  { %v1279_v40 = vpop.f32.mrb[25].mxu1 }
 0xdd7   :  { %1300 = vperm.xlu0 %1888, %v1279_v40   ;;  %v1833_v58 = vpop.f32.mrb[26].mxu1 }
 0xdd8   :  { %v1282_v41 = vpop.f32.mrb[27].mxu1 }
 0xdd9   :  { %1305 = vperm.xlu1 %1889, %v1282_v41  }
 0xddb   :  { %1310 = vperm.xlu0 %1888, %v1832_v36  }
 0xddd   :  { %1315 = vperm.xlu1 %1889, %v1833_v58  }
 0xe4e   :  { %v1122_v42 = vpop.permute.xlu0 %1121 }
 0xe4f   :  { %v1139_v43 = vmul.f32 %v2271_v11, %v1122_v42  ;;  %v1294_v42 = vmul.f32 %v2271_v11, %v1279_v40 }
 0xe50   :  { %v1127_v23 = vpop.permute.xlu1 %1126 }
 0xe51   :  { %v1140_v45 = vmul.f32 %v2274_v12, %v1127_v23  ;;  %v1295_v23 = vmul.f32 %v2274_v12, %v1282_v41 }
 0xe52   :  { %v1132_v48 = vpop.permute.xlu0 %1131 }
 0xe53   :  { %v1910_v49 = vpack.i.bf16 %v1140_v45, %v1139_v43  ;;  %v1141_v51 = vmul.f32 %v2279_v21, %v1132_v48 }
 0xe54   :  { %v1137_v50 = vpop.permute.xlu1 %1136 }
 0xe55   :  { %v1142_v60 = vmul.f32 %v2282_v22, %v1137_v50  ;;  %1911 = vrot.lane.b32.xlu0 %v1910_v49, %s2064_s30  ;;  %v1296_v50 = vmul.f32 %v1832_v36, %v2279_v21 }
 0xe56   :  { %v1301_v53 = vpop.permute.xlu0 %1300 }
 0xe57   :  { %v1915_v55 = vpack.i.bf16 %v1142_v60, %v1141_v51  ;;  %v1318_v63 = vmul.f32 %v2271_v11, %v1301_v53  ;;  %v1297_v51 = vmul.f32 %v1833_v58, %v2282_v22 }
 0xe58   :  { %v1306_v62 = vpop.permute.xlu1 %1305 }
 0xe59   :  { %v1319_v13 = vmul.f32 %v2274_v12, %v1306_v62  ;;  %1916 = vrot.lane.b32.xlu1 %v1915_v55, %s2064_s30 }
 0xe5a   :  { %v1311_v1 = vpop.permute.xlu0 %1310 }
 0xe5b   :  { %v1920_v2 = vpack.i.bf16 %v1319_v13, %v1318_v63  ;;  %v1320_v3 = vmul.f32 %v2279_v21, %v1311_v1  ;;  %v1345_v21 = vrot.slane %v2468_v10, 4 }
 0xe5c   :  { %v1316_v54 = vpop.permute.xlu1 %1315 }
 0xe5d   :  { %v1321_v6 = vmul.f32 %v2282_v22, %v1316_v54  ;;  %1921 = vrot.lane.b32.xlu0 %v1920_v2, %s2064_s30 }
 0xe5f   :  { %v1925_v7 = vpack.i.bf16 %v1321_v6, %v1320_v3 }
 0xe61   :  { %1926 = vrot.lane.b32.xlu1 %v1925_v7, %s2064_s30 }
 0xec7   :  { %v1912_v8 = vpop.permute.xlu0 %1911 }
 0xec8   :  { %v1914_v59 = vunpack.i.h.bf16 %v1912_v8  ;;  %v1913_v15 = vunpack.i.l.bf16 %v1912_v8 }
 0xeca   :  { %v1159_v56 = vsel %vm166_vm1, %v1115_v9, %v1913_v15  ;;  %v1160_v20 = vsel %vm166_vm1, %v1116_v17, %v1914_v59 }
 0xecb   :  { %v1163_v26 = vpack.c.bf16 %v1160_v20, %v1159_v56  ;;  %v1917_v27 = vpop.permute.xlu1 %1916 }
 0xecc   :  { %v1919_v29 = vunpack.i.h.bf16 %v1917_v27  ;;  %v1918_v18 = vunpack.i.l.bf16 %v1917_v27 }
 0xecd   :  { %1821 = vmatpush3.bf16.msra.mxu0 %v1163_v26 }
 0xece   :  { %v1162_v30 = vsel %vm166_vm1, %v1118_v28, %v1919_v29  ;;  %v1161_v19 = vsel %vm166_vm1, %v1117_v33, %v1918_v18  ;;  %1822 = vmatprep.subr.bf16.mxu0 %v2059_v0 }
 0xecf   :  { %v1164_v32 = vpack.c.bf16 %v1162_v30, %v1161_v19  ;;  %v1922_v35 = vpop.permute.xlu0 %1921 }
 0xed0   :  { %v1924_v43 = vunpack.i.h.bf16 %v1922_v35  ;;  %v1923_v45 = vunpack.i.l.bf16 %v1922_v35 }
 0xed1   :  { %1823 = vmatpush3.bf16.msra.mxu0 %v1164_v32 }
 0xed2   :  { %v1338_v31 = vsel %vm166_vm1, %v1294_v42, %v1923_v45  ;;  %v1339_v34 = vsel %vm166_vm1, %v1295_v23, %v1924_v43  ;;  %1834 = vmatprep.subr.bf16.mxu0 %v2059_v0 }
 0xed3   :  { %v1342_v48 = vpack.c.bf16 %v1339_v34, %v1338_v31  ;;  %v1927_v49 = vpop.permute.xlu1 %1926 }
 0xed4   :  { %v1929_v60 = vunpack.i.h.bf16 %v1927_v49  ;;  %v1928_v53 = vunpack.i.l.bf16 %v1927_v49  ;;  %1825 = vmatmul.mubr.msk.bf16.vlgmr.msra.gmra.mrb[20].mxu0 %vm166_vm1, %v2468_v10 }
 0xed5   :  { %1835 = vmatpush3.bf16.msra.mxu0 %v1342_v48  ;;  %1838 = vmatprep.mubr.msk.bf16.mxu0 %vm2060_vm0, %v2059_v0 }
 0xed6   :  { %v1341_v11 = vsel %vm166_vm1, %v1297_v51, %v1929_v60  ;;  %v1340_v12 = vsel %vm166_vm1, %v1296_v50, %v1928_v53  ;;  %1836 = vmatprep.subr.bf16.mxu0 %v2059_v0 }
 0xed7   :  { %v1343_v40 = vpack.c.bf16 %v1341_v11, %v1340_v12 }
 0xed9   :  { %1837 = vmatpush3.bf16.msra.mxu0 %v1343_v40 }
 0xeda   :  { %1850 = vmatprep.subr.bf16.mxu0 %v2059_v0 }
 0xedc   :  { %1839 = vmatmul.mubr.msk.bf16.vlgmr.msra.gmra.mrb[24].mxu0 %vm166_vm1, %v1345_v21 }
 0xedd   :  { %1851 = vmatpush3.bf16.msra.mxu0 %v2363_v14  ;;  %1854 = vmatprep.mubr.msk.bf16.mxu0 %vm2060_vm0, %v2059_v0 }
 0xede   :  { %1852 = vmatprep.subr.bf16.mxu0 %v2059_v0 }
 0xee1   :  { %1853 = vmatpush3.bf16.msra.mxu0 %v2369_v52 }
 0xfa7   :  { %v1202_v22 = vpop.f32.mrb[20].mxu0 }
 0xfa8   :  { %1967 = vrcp.f32 %v1202_v22  ;;  %v1826_v36 = vpop.f32.mrb[21].mxu0 }
 0xfa9   :  { %v1205_v58 = vpop.f32.mrb[22].mxu0 }
 0xfaa   :  { %v1827_v41 = vpop.f32.mrb[23].mxu0 }
 0xfaf   :  { %v1383_v55 = vpop.f32.mrb[24].mxu0 }
 0xfb0   :  { %1969 = vrcp.f32 %v1383_v55  ;;  %v1840_v10 = vpop.f32.mrb[25].mxu0 }
 0xfb1   :  { %v1386_v62 = vpop.f32.mrb[26].mxu0 }
 0xfb2   :  { %v1968_v63 = vpop.eup %1967  ;;  %v1841_v13 = vpop.f32.mrb[27].mxu0 }
 0xfb3   :  { %1210 = vrot.lane.b32.xlu0 %v1968_v63, %s2062_s5 }
 0xfba   :  { %v1970_v14 = vpop.eup %1969 }
 0xfbb   :  { %1391 = vrot.lane.b32.xlu1 %v1970_v14, %s2062_s5 }
0x1025   :  { %v1211_v1 = vpop.permute.xlu0 %1210 }
0x1026   :  { %v1213_v54 = vmul.f32 %v1211_v1, %v1202_v22 }
0x102d   :  { %v1392_v2 = vpop.permute.xlu1 %1391 }
0x102e   :  { %v1394_v52 = vmul.f32 %v1392_v2, %v1383_v55 }
0x1030   :  { %v1395_v3 = vpack.c.bf16 %v1394_v52, %v1213_v54 }
0x1032   :  { %1847 = vmatmul.mubr.msk.bf16.vlgmr.msra.gmra.mrb[28].mxu1 %vm166_vm1, %v1395_v3 }
0x1033   :  { %1859 = vmatpush3.bf16.msra.mxu1 %v2397_v37  ;;  %1866 = vmatprep.mubr.msk.bf16.mxu1 %vm2060_vm0, %v2059_v0 }
0x1034   :  { %1860 = vmatprep.subr.bf16.mxu1 %v2059_v0 }
0x1037   :  { %1861 = vmatpush3.bf16.msra.mxu1 %v2404_v4 }
0x1038   :  { %1862 = vmatprep.subr.bf16.mxu1 %v2059_v0 }
0x103b   :  { %1863 = vmatpush3.bf16.msra.mxu1 %v2411_v5 }
0x103c   :  { %1864 = vmatprep.subr.bf16.mxu1 %v2059_v0 }
0x103f   :  { %1865 = vmatpush3.bf16.msra.mxu1 %v2418_v24 }
0x1105   :  { %v1433_v6 = vpop.f32.mrb[28].mxu1 }
0x1106   :  { %v1434_v7 = vadd.f32 %v2350_v38, %v1433_v6  ;;  %v1848_v8 = vpop.f32.mrb[29].mxu1 }
0x1107   :  { %v1436_v37 = vpop.f32.mrb[30].mxu1 }
0x1108   :  { %v1437_v9 = vadd.f32 %v2350_v38, %v1436_v37  ;;  %v1849_v17 = vpop.f32.mrb[31].mxu1  ;;  %v1440_v59 = vadd.f32 %v1434_v7, %v2456_v46 }
0x110a   :  { %v1442_v4 = vsel %vm166_vm1, %v1440_v59, 0.0  ;;  %v1441_v15 = vadd.f32 %v1437_v9, %v2459_v47 }
0x110b   :  { %1443 = vadd.xlane.f32.xlu0 %v1442_v4 }
0x110c   :  { %v1445_v5 = vsel %vm166_vm1, %v1441_v15, 0.0 }
0x110d   :  { %1446 = vadd.xlane.f32.xlu1 %v1445_v5 }
0x1198   :  { %v1444_v0 = vpop.xlane.xlu0 %1443 }
0x1199   :  { %v1448_v24 = vmul.f32 0.03125, %v1444_v0 }
0x119a   :  { %v1447_v56 = vpop.xlane.xlu1 %1446 }
0x119b   :  { %v1450_v20 = vsub.f32 %v1440_v59, %v1448_v24  ;;  %v1449_v26 = vmul.f32 0.03125, %v1447_v56 }
0x119d   :  { %v1451_v27 = vsub.f32 %v1441_v15, %v1449_v26  ;;  %v1452_v33 = vmul.f32 %v1450_v20, %v1450_v20 }
0x119f   :  { %v1454_v38 = vsel %vm166_vm1, %v1452_v33, 0.0  ;;  %v1453_v28 = vmul.f32 %v1451_v27, %v1451_v27 }
0x11a0   :  { %1455 = vadd.xlane.f32.xlu0 %v1454_v38 }
0x11a1   :  { %v1457_v46 = vsel %vm166_vm1, %v1453_v28, 0.0 }
0x11a4   :  { %1458 = vadd.xlane.f32.xlu0 %v1457_v46 }
0x122d   :  { %v1456_v29 = vpop.xlane.xlu0 %1455 }
0x122e   :  { %v1460_v47 = vmul.f32 0.03125, %v1456_v29 }
0x1230   :  { %v1462_v18 = vadd.f32 1e-12, %v1460_v47 }
0x1231   :  { %v1459_v30 = vpop.xlane.xlu0 %1458 }
0x1232   :  { %1971 = vrsqrt.f32 %v1462_v18  ;;  %v1461_v19 = vmul.f32 0.03125, %v1459_v30 }
0x1234   :  { %v1463_v32 = vadd.f32 1e-12, %v1461_v19 }
0x1236   :  { %1973 = vrsqrt.f32 %v1463_v32 }
0x123c   :  { %v1972_v35 = vpop.eup %1971 }
0x123d   :  { %v1466_v42 = vmul.f32 %v1972_v35, %v1450_v20 }
0x123f   :  { %v1468_v43 = vmul.f32 %v2377_v57, %v1466_v42 }
0x1240   :  { %v1974_v23 = vpop.eup %1973 }
0x1241   :  { %v1467_v45 = vmul.f32 %v1974_v23, %v1451_v27  ;;  %v1470_v34 = vadd.f32 %v2383_v16, %v1468_v43 }
0x1243   :  { %v1469_v31 = vmul.f32 %v2377_v57, %v1467_v45 }
0x1245   :  { %v1471_v48 = vadd.f32 %v2383_v16, %v1469_v31 }
0x1247   :  { %v1472_v49 = vpack.c.bf16 %v1471_v48, %v1470_v34 }
0x1249   :  { %1855 = vmatmul.mubr.msk.bf16.vlgmr.msra.gmra.mrb[28].mxu0 %vm166_vm1, %v1472_v49 }
0x131c   :  { %v1510_v50 = vpop.f32.mrb[28].mxu0 }
0x131d   :  { %v1511_v51 = vadd.f32 %v2425_v25, %v1510_v50  ;;  %v1856_v60 = vpop.f32.mrb[29].mxu0 }
0x131e   :  { %v1513_v53 = vpop.f32.mrb[30].mxu0 }
0x131f   :  { %v1517_v11 = vmul.f32 %v1511_v51, %v1511_v51  ;;  %v1514_v12 = vadd.f32 %v2425_v25, %v1513_v53  ;;  %v1857_v40 = vpop.f32.mrb[31].mxu0 }
0x1321   :  { %v1519_v21 = vmul.f32 %v1517_v11, %v1511_v51  ;;  %v1518_v22 = vmul.f32 %v1514_v12, %v1514_v12 }
0x1323   :  { %v1521_v36 = vmul.f32 0.044715, %v1519_v21  ;;  %v1520_v57 = vmul.f32 %v1518_v22, %v1514_v12 }
0x1325   :  { %v1523_v58 = vadd.f32 %v1521_v36, %v1511_v51  ;;  %v1522_v41 = vmul.f32 0.044715, %v1520_v57 }
0x1327   :  { %v1525_v55 = vmul.f32 0.7978846, %v1523_v58  ;;  %v1524_v16 = vadd.f32 %v1522_v41, %v1514_v12 }
0x1329   :  { %1975 = vtanh.f32 %v1525_v55  ;;  %v1526_v10 = vmul.f32 0.7978846, %v1524_v16 }
0x132b   :  { %1977 = vtanh.f32 %v1526_v10 }
0x1333   :  { %v1976_v62 = vpop.eup %1975 }
0x1334   :  { %v1529_v63 = vadd.f32 1.0, %v1976_v62 }
0x1335   :  { %v1978_v13 = vpop.eup %1977 }
0x1336   :  { %v1531_v14 = vmul.f32 0.5, %v1529_v63  ;;  %v1530_v1 = vadd.f32 1.0, %v1978_v13 }
0x1338   :  { %v1532_v2 = vmul.f32 0.5, %v1530_v1  ;;  %v1533_v54 = vmul.f32 %v1531_v14, %v1511_v51 }
0x133a   :  { %v1534_v25 = vmul.f32 %v1532_v2, %v1514_v12 }
0x133c   :  { %v1535_v52 = vpack.c.bf16 %v1534_v25, %v1533_v54 }
0x133e   :  { %1867 = vmatmul.mubr.msk.bf16.vlgmr.msra.gmra.mrb[32].mxu1 %vm884_vm10, %v1535_v52 }
0x1411   :  { %v1573_v3 = vpop.f32.mrb[32].mxu1 }
0x1412   :  { %v1574_v6 = vadd.f32 %v2435_v61, %v1573_v3  ;;  %v1868_v7 = vpop.f32.mrb[33].mxu1 }
0x1413   :  { %v1576_v8 = vpop.f32.mrb[34].mxu1 }
0x1414   :  { %v1577_v37 = vadd.f32 %v2435_v61, %v1576_v8  ;;  %v1869_v9 = vpop.f32.mrb[35].mxu1  ;;  %v1580_v17 = vadd.f32 %v1574_v6, %v1470_v34 }
0x1416   :  { %v1582_v59 = vsel %vm166_vm1, %v1580_v17, 0.0  ;;  %v1581_v4 = vadd.f32 %v1577_v37, %v1471_v48 }
0x1417   :  { %1583 = vadd.xlane.f32.xlu1 %v1582_v59 }
0x1418   :  { %v1585_v15 = vsel %vm166_vm1, %v1581_v4, 0.0 }
0x1419   :  { %1586 = vadd.xlane.f32.xlu0 %v1585_v15 }
0x14a4   :  { %v1584_v5 = vpop.xlane.xlu1 %1583 }
0x14a5   :  { %v1588_v0 = vmul.f32 0.03125, %v1584_v5 }
0x14a6   :  { %v1587_v24 = vpop.xlane.xlu0 %1586 }
0x14a7   :  { %v1590_v56 = vsub.f32 %v1580_v17, %v1588_v0  ;;  %v1589_v20 = vmul.f32 0.03125, %v1587_v24 }
0x14a9   :  { %v1591_v26 = vsub.f32 %v1581_v4, %v1589_v20  ;;  %v1592_v27 = vmul.f32 %v1590_v56, %v1590_v56 }
0x14ab   :  { %v1594_v33 = vsel %vm166_vm1, %v1592_v27, 0.0  ;;  %v1593_v38 = vmul.f32 %v1591_v26, %v1591_v26 }
0x14ac   :  { %1595 = vadd.xlane.f32.xlu1 %v1594_v33 }
0x14ad   :  { %v1597_v61 = vsel %vm166_vm1, %v1593_v38, 0.0 }
0x14ae   :  { %1598 = vadd.xlane.f32.xlu0 %v1597_v61 }
0x1539   :  { %v1596_v28 = vpop.xlane.xlu1 %1595 }
0x153a   :  { %v1600_v46 = vmul.f32 0.03125, %v1596_v28 }
0x153b   :  { %v1599_v29 = vpop.xlane.xlu0 %1598 }
0x153c   :  { %v1602_v47 = vadd.f32 1e-12, %v1600_v46  ;;  %v1601_v18 = vmul.f32 0.03125, %v1599_v29 }
0x153e   :  { %1979 = vrsqrt.f32 %v1602_v47  ;;  %v1603_v30 = vadd.f32 1e-12, %v1601_v18 }
0x1540   :  { %1981 = vrsqrt.f32 %v1603_v30 }
0x1548   :  { %v1980_v19 = vpop.eup %1979 }
0x1549   :  { %v1606_v32 = vmul.f32 %v1980_v19, %v1590_v56 }
0x154a   :  { %v1982_v35 = vpop.eup %1981 }
0x154b   :  { %v1608_v42 = vmul.f32 %v2446_v39, %v1606_v32  ;;  %v1607_v23 = vmul.f32 %v1982_v35, %v1591_v26 }
0x154d   :  { %v1609_v43 = vmul.f32 %v2446_v39, %v1607_v23  ;;  %v1610_v45 = vadd.f32 %v2452_v44, %v1608_v42 }
0x154f   :  { %v1611_v31 = vadd.f32 %v2452_v44, %v1609_v43  ;;  %1612 = vst.msk [vmem:[#allocation7] sm:$0xff] %vm166_vm1, %v1610_v45 }
0x1551   :  { %1613 = vst.msk [vmem:[#allocation7 + $0x8] sm:$0xff] %vm166_vm1, %v1611_v31 }
0x1552   :  { %2038 = shalt.err (!%p2035_p6)
}
0x1553   :  { %s2606_s6 = sld [smem:[#allocation12_spill]] }
0x1559   :  { %s2039_s16 = scalar_lea.hbm %s2606_s6, 256 }
0x155a   :  { %p2040_p7 = scmp.ne.s32.totalorder %s2606_s6, %s2039_s16  ;;  %p2043_p8 = scmp.lt.u32.totalorder %s2039_s16, %s2606_s6 }
0x155c   :  { %p2045_p9 = pnand %p2043_p8, %p2040_p7 }
0x155e   :  { %2048 = shalt.err (!%p2045_p9)
}
0x155f   :  { %s2066_s21 = smov 128   ;;  %s2067_s23 = smov 8  }
0x1560   :  { %1625 = dma.vmem_to_hbm [thread:$0]  %s1620_s15, 256, %s2606_s6, [#allocation4], %s2066_s21, %s2066_s21, %s2067_s23  }
0x1561   :  { %2053 = dma.done.wait [#allocation4], 256  }
0x1562   :  { %2054 = vsyncadd [#allocation4], 4294967040 }
0x1563   :  { %1629 = vsyncpa [#allocation3], 1 }
0x1564   :  { %1630 = vsyncpa [#allocation6], 1 }
0x1565   :  { %1631 = vsyncpa [#allocation4], 1 }

</bundles_post_ra>
